<compile_context>
chip_gen: v6e
topology: v6e:2x2x1
jax: 0.10.0
libtpu: 0.0.40
codegen_flags: <defaults>
</compile_context>

<pallas_src>
import functools

import jax
import jax.numpy as jnp
from jax.experimental import pallas as pl
from jax.experimental.pallas import tpu as pltpu


# ----------------------------- fused Pallas kernel ---------------------------

def _fused_forward_kernel(x_ref, off_ref, scl_ref, w_in_ref, b_in_ref, *rest,
                          n_layers):
    """Entire forward in a single kernel invocation (no grid).

    rest = [w_ih_0, w_hh_0, b_ih_0, b_hh_0, ..., w1, b1, w2, b2, out_ref]
    """
    gru_refs = rest[:4 * n_layers]
    w1_ref, b1_ref, w2_ref, b2_ref, out_ref = rest[4 * n_layers:]

    B, T, D = x_ref.shape
    H = w_in_ref.shape[1]

    # (x + offsets) * scalings fused into the kernel (free VPU work).
    xn = (x_ref[...] + off_ref[...]) * scl_ref[...]               # (B, T, D)

    # Time-major stacking of the inputs, then input_dense for ALL timesteps in
    # one MXU matmul.
    x_rows = [xn[:, t, :] for t in range(T)]                      # T x (B, D)
    xf = jnp.concatenate(x_rows, axis=0)                          # (T*B, D)
    h_in = jnp.dot(xf, w_in_ref[...],
                   preferred_element_type=jnp.float32) + b_in_ref[...]
    cur = [h_in[t * B:(t + 1) * B, :] for t in range(T)]          # T x (B, H)

    for layer in range(n_layers):
        w_ih = gru_refs[4 * layer + 0][...]                       # (H, 3H)
        w_hh = gru_refs[4 * layer + 1][...]                       # (H, 3H)
        b_ih = gru_refs[4 * layer + 2][...]                       # (1, 3H)
        b_hh = gru_refs[4 * layer + 3][...]                       # (1, 3H)

        # x-side gate matmul hoisted out of the recurrence: one dot for all T.
        x_cat = jnp.concatenate(cur, axis=0)                      # (T*B, H)
        gx_all = jnp.dot(x_cat, w_ih,
                         preferred_element_type=jnp.float32) + b_ih

        h = jnp.zeros((B, H), jnp.float32)
        nxt = []
        for t in range(T):  # fully unrolled; h stays in vregs
            gx = gx_all[t * B:(t + 1) * B, :]
            gh = jnp.dot(h, w_hh, preferred_element_type=jnp.float32) + b_hh
            r = jax.nn.sigmoid(gx[:, 0:H] + gh[:, 0:H])
            z = jax.nn.sigmoid(gx[:, H:2 * H] + gh[:, H:2 * H])
            n = jnp.tanh(gx[:, 2 * H:3 * H] + r * gh[:, 2 * H:3 * H])
            h = (1.0 - z) * n + z * h
            nxt.append(h)
        cur = nxt
        # TODO(synk): nn.Dropout between GRU layers omitted (eval mode => identity).

    # ClassifierHead_MLP (do_flatten=True): flatten (B, T, H) -> (B, T*H) is
    # exactly the lane-dense concatenation of the per-timestep hidden states.
    flat = jnp.concatenate(cur, axis=1)                           # (B, T*H)
    # TODO(synk): dropout in the head omitted (eval mode => identity).
    z1 = jnp.dot(flat, w1_ref[...],
                 preferred_element_type=jnp.float32) + b1_ref[...]
    z1 = jnp.maximum(z1, 0.0)
    logits = jnp.dot(z1, w2_ref[...],
                     preferred_element_type=jnp.float32) + b2_ref[...]
    out_ref[...] = logits.astype(out_ref.dtype)


def timeseries_gru_forward(x, params):
    """x: (B, T, D) -> logits (B, num_classes). Eval-mode forward."""
    B, T, D = x.shape
    n_layers = len(params["gru"])
    num_classes = params["w2"].shape[1]

    gru_args = []
    for lp in params["gru"]:
        gru_args += [lp["w_ih"], lp["w_hh"], lp["b_ih"], lp["b_hh"]]

    kernel = functools.partial(_fused_forward_kernel, n_layers=n_layers)
    return pl.pallas_call(
        kernel,
        out_shape=jax.ShapeDtypeStruct((B, num_classes), x.dtype),
        compiler_params=pltpu.CompilerParams(vmem_limit_bytes=32 * 1024 * 1024),
    )(x, params["offsets"], params["scalings"], params["w_in"], params["b_in"],
      *gru_args, params["w1"], params["b1"], params["w2"], params["b2"])


# ----------------------------- params / reference ----------------------------

def init_params(key, *, d_timeseries, d_hidden, d_mlp2, n_timesteps, n_layers,
                num_classes, dtype=jnp.float32):
    # 6 dense tensors outside the GRU + 4 per GRU layer.
    keys = jax.random.split(key, 6 + 4 * n_layers)
    kit = iter(keys)

    def u(shape, scale):
        return (jax.random.uniform(next(kit), shape, dtype=dtype) * 2.0 - 1.0) * scale

    s_in = 1.0 / jnp.sqrt(d_timeseries)
    s_h = 1.0 / jnp.sqrt(d_hidden)
    s_flat = 1.0 / jnp.sqrt(d_hidden * n_timesteps)
    s_m = 1.0 / jnp.sqrt(d_mlp2)

    params = {
        "offsets": jnp.zeros((1, 1, d_timeseries), dtype),
        "scalings": jnp.ones((1, 1, d_timeseries), dtype),
        "w_in": u((d_timeseries, d_hidden), s_in),
        "b_in": u((1, d_hidden), s_in),
        "gru": [],
        "w1": u((d_hidden * n_timesteps, d_mlp2), s_flat),
        "b1": u((1, d_mlp2), s_flat),
        "w2": u((d_mlp2, num_classes), s_m),
        "b2": u((1, num_classes), s_m),
    }
    for _ in range(n_layers):
        params["gru"].append({
            "w_ih": u((d_hidden, 3 * d_hidden), s_h),   # transposed PyTorch weight_ih
            "w_hh": u((d_hidden, 3 * d_hidden), s_h),   # transposed PyTorch weight_hh
            "b_ih": u((1, 3 * d_hidden), s_h),
            "b_hh": u((1, 3 * d_hidden), s_h),
        })
    return params


def _reference_forward(x, params):
    """Pure-jnp reference with identical math (for a correctness check)."""
    B, T, D = x.shape
    H = params["w_in"].shape[1]
    xn = (x + params["offsets"]) * params["scalings"]
    seq = (xn.reshape(B * T, D) @ params["w_in"] + params["b_in"]).reshape(B, T, H)
    for lp in params["gru"]:
        h = jnp.zeros((B, H), jnp.float32)
        outs = []
        for t in range(T):
            gx = seq[:, t, :] @ lp["w_ih"] + lp["b_ih"]
            gh = h @ lp["w_hh"] + lp["b_hh"]
            r = jax.nn.sigmoid(gx[:, :H] + gh[:, :H])
            z = jax.nn.sigmoid(gx[:, H:2 * H] + gh[:, H:2 * H])
            n = jnp.tanh(gx[:, 2 * H:] + r * gh[:, 2 * H:])
            h = (1.0 - z) * n + z * h
            outs.append(h)
        seq = jnp.stack(outs, axis=1)
    flat = seq.reshape(B, T * H)
    z1 = jnp.maximum(flat @ params["w1"] + params["b1"], 0.0)
    return z1 @ params["w2"] + params["b2"]


# ----------------------------------- main ------------------------------------

if __name__ == "__main__":
    B, T, D = 2, 8, 4
    D_HIDDEN, D_MLP2, N_LAYERS, NUM_CLASSES = 32, 64, 2, 10

    key = jax.random.PRNGKey(0)
    k_x, k_p = jax.random.split(key)

    x = jax.random.normal(k_x, (B, T, D), dtype=jnp.float32)
    params = init_params(
        k_p, d_timeseries=D, d_hidden=D_HIDDEN, d_mlp2=D_MLP2,
        n_timesteps=T, n_layers=N_LAYERS, num_classes=NUM_CLASSES)

    fwd = jax.jit(timeseries_gru_forward)
    logits = jax.block_until_ready(fwd(x, params))
    assert logits.shape == (B, NUM_CLASSES)

    ref = jax.block_until_ready(_reference_forward(x, params))
    assert jnp.allclose(logits, ref, atol=1e-3, rtol=1e-3), "mismatch vs reference"
    print("KERNEL_OK")
</pallas_src>

<mosaic_0001>
module attributes {stable_mosaic.version = 11 : i64} {
  func.func @_fused_forward_kernel(%arg0: memref<2x8x4xf32, #tpu.memory_space<vmem>>, %arg1: memref<1x1x4xf32, #tpu.memory_space<vmem>>, %arg2: memref<1x1x4xf32, #tpu.memory_space<vmem>>, %arg3: memref<4x32xf32, #tpu.memory_space<vmem>>, %arg4: memref<1x32xf32, #tpu.memory_space<vmem>>, %arg5: memref<32x96xf32, #tpu.memory_space<vmem>>, %arg6: memref<32x96xf32, #tpu.memory_space<vmem>>, %arg7: memref<1x96xf32, #tpu.memory_space<vmem>>, %arg8: memref<1x96xf32, #tpu.memory_space<vmem>>, %arg9: memref<32x96xf32, #tpu.memory_space<vmem>>, %arg10: memref<32x96xf32, #tpu.memory_space<vmem>>, %arg11: memref<1x96xf32, #tpu.memory_space<vmem>>, %arg12: memref<1x96xf32, #tpu.memory_space<vmem>>, %arg13: memref<256x64xf32, #tpu.memory_space<vmem>>, %arg14: memref<1x64xf32, #tpu.memory_space<vmem>>, %arg15: memref<64x10xf32, #tpu.memory_space<vmem>>, %arg16: memref<1x10xf32, #tpu.memory_space<vmem>>, %arg17: memref<2x10xf32, #tpu.memory_space<vmem>>) attributes {dimension_semantics = [], scalar_prefetch = 0 : i64, scratch_operands = 0 : i64, tpu.core_type = #tpu.core_type<tc>} {
    %c0 = arith.constant 0 : index
    %c0_0 = arith.constant 0 : index
    %c0_1 = arith.constant 0 : index
    %0 = vector.load %arg0[%c0, %c0_0, %c0_1] : memref<2x8x4xf32, #tpu.memory_space<vmem>>, vector<2x8x4xf32>
    %c0_2 = arith.constant 0 : index
    %c0_3 = arith.constant 0 : index
    %c0_4 = arith.constant 0 : index
    %1 = vector.load %arg1[%c0_2, %c0_3, %c0_4] : memref<1x1x4xf32, #tpu.memory_space<vmem>>, vector<1x1x4xf32>
    %2 = vector.broadcast %1 : vector<1x1x4xf32> to vector<2x8x4xf32>
    %3 = arith.addf %0, %2 : vector<2x8x4xf32>
    %c0_5 = arith.constant 0 : index
    %c0_6 = arith.constant 0 : index
    %c0_7 = arith.constant 0 : index
    %4 = vector.load %arg2[%c0_5, %c0_6, %c0_7] : memref<1x1x4xf32, #tpu.memory_space<vmem>>, vector<1x1x4xf32>
    %5 = vector.broadcast %4 : vector<1x1x4xf32> to vector<2x8x4xf32>
    %6 = arith.mulf %3, %5 : vector<2x8x4xf32>
    %7 = vector.extract_strided_slice %6 {offsets = [0, 0, 0], sizes = [2, 1, 4], strides = [1, 1, 1]} : vector<2x8x4xf32> to vector<2x1x4xf32>
    %8 = vector.shape_cast %7 : vector<2x1x4xf32> to vector<2x4xf32>
    %9 = vector.extract_strided_slice %6 {offsets = [0, 1, 0], sizes = [2, 1, 4], strides = [1, 1, 1]} : vector<2x8x4xf32> to vector<2x1x4xf32>
    %10 = vector.shape_cast %9 : vector<2x1x4xf32> to vector<2x4xf32>
    %11 = vector.extract_strided_slice %6 {offsets = [0, 2, 0], sizes = [2, 1, 4], strides = [1, 1, 1]} : vector<2x8x4xf32> to vector<2x1x4xf32>
    %12 = vector.shape_cast %11 : vector<2x1x4xf32> to vector<2x4xf32>
    %13 = vector.extract_strided_slice %6 {offsets = [0, 3, 0], sizes = [2, 1, 4], strides = [1, 1, 1]} : vector<2x8x4xf32> to vector<2x1x4xf32>
    %14 = vector.shape_cast %13 : vector<2x1x4xf32> to vector<2x4xf32>
    %15 = vector.extract_strided_slice %6 {offsets = [0, 4, 0], sizes = [2, 1, 4], strides = [1, 1, 1]} : vector<2x8x4xf32> to vector<2x1x4xf32>
    %16 = vector.shape_cast %15 : vector<2x1x4xf32> to vector<2x4xf32>
    %17 = vector.extract_strided_slice %6 {offsets = [0, 5, 0], sizes = [2, 1, 4], strides = [1, 1, 1]} : vector<2x8x4xf32> to vector<2x1x4xf32>
    %18 = vector.shape_cast %17 : vector<2x1x4xf32> to vector<2x4xf32>
    %19 = vector.extract_strided_slice %6 {offsets = [0, 6, 0], sizes = [2, 1, 4], strides = [1, 1, 1]} : vector<2x8x4xf32> to vector<2x1x4xf32>
    %20 = vector.shape_cast %19 : vector<2x1x4xf32> to vector<2x4xf32>
    %21 = vector.extract_strided_slice %6 {offsets = [0, 7, 0], sizes = [2, 1, 4], strides = [1, 1, 1]} : vector<2x8x4xf32> to vector<2x1x4xf32>
    %22 = vector.shape_cast %21 : vector<2x1x4xf32> to vector<2x4xf32>
    %23 = tpu.concatenate %8, %10, %12, %14, %16, %18, %20, %22 in 0 : vector<2x4xf32>, vector<2x4xf32>, vector<2x4xf32>, vector<2x4xf32>, vector<2x4xf32>, vector<2x4xf32>, vector<2x4xf32>, vector<2x4xf32> -> vector<16x4xf32>
    %c0_8 = arith.constant 0 : index
    %c0_9 = arith.constant 0 : index
    %24 = vector.load %arg3[%c0_8, %c0_9] : memref<4x32xf32, #tpu.memory_space<vmem>>, vector<4x32xf32>
    %cst = arith.constant dense<0.000000e+00> : vector<16x32xf32>
    %25 = tpu.matmul %23, %24, %cst {dimension_numbers = #tpu.dot_dimension_numbers<[1], [0], [0], [1], [0, 0, 1, 1], [], []>} : vector<16x4xf32>, vector<4x32xf32>, vector<16x32xf32> -> vector<16x32xf32>
    %c0_10 = arith.constant 0 : index
    %c0_11 = arith.constant 0 : index
    %26 = vector.load %arg4[%c0_10, %c0_11] : memref<1x32xf32, #tpu.memory_space<vmem>>, vector<1x32xf32>
    %27 = vector.broadcast %26 : vector<1x32xf32> to vector<16x32xf32>
    %28 = arith.addf %25, %27 : vector<16x32xf32>
    %29 = vector.extract_strided_slice %28 {offsets = [0, 0], sizes = [2, 32], strides = [1, 1]} : vector<16x32xf32> to vector<2x32xf32>
    %30 = vector.extract_strided_slice %28 {offsets = [2, 0], sizes = [2, 32], strides = [1, 1]} : vector<16x32xf32> to vector<2x32xf32>
    %31 = vector.extract_strided_slice %28 {offsets = [4, 0], sizes = [2, 32], strides = [1, 1]} : vector<16x32xf32> to vector<2x32xf32>
    %32 = vector.extract_strided_slice %28 {offsets = [6, 0], sizes = [2, 32], strides = [1, 1]} : vector<16x32xf32> to vector<2x32xf32>
    %33 = vector.extract_strided_slice %28 {offsets = [8, 0], sizes = [2, 32], strides = [1, 1]} : vector<16x32xf32> to vector<2x32xf32>
    %34 = vector.extract_strided_slice %28 {offsets = [10, 0], sizes = [2, 32], strides = [1, 1]} : vector<16x32xf32> to vector<2x32xf32>
    %35 = vector.extract_strided_slice %28 {offsets = [12, 0], sizes = [2, 32], strides = [1, 1]} : vector<16x32xf32> to vector<2x32xf32>
    %36 = vector.extract_strided_slice %28 {offsets = [14, 0], sizes = [2, 32], strides = [1, 1]} : vector<16x32xf32> to vector<2x32xf32>
    %c0_12 = arith.constant 0 : index
    %c0_13 = arith.constant 0 : index
    %37 = vector.load %arg5[%c0_12, %c0_13] : memref<32x96xf32, #tpu.memory_space<vmem>>, vector<32x96xf32>
    %c0_14 = arith.constant 0 : index
    %c0_15 = arith.constant 0 : index
    %38 = vector.load %arg6[%c0_14, %c0_15] : memref<32x96xf32, #tpu.memory_space<vmem>>, vector<32x96xf32>
    %c0_16 = arith.constant 0 : index
    %c0_17 = arith.constant 0 : index
    %39 = vector.load %arg7[%c0_16, %c0_17] : memref<1x96xf32, #tpu.memory_space<vmem>>, vector<1x96xf32>
    %c0_18 = arith.constant 0 : index
    %c0_19 = arith.constant 0 : index
    %40 = vector.load %arg8[%c0_18, %c0_19] : memref<1x96xf32, #tpu.memory_space<vmem>>, vector<1x96xf32>
    %41 = tpu.concatenate %29, %30, %31, %32, %33, %34, %35, %36 in 0 : vector<2x32xf32>, vector<2x32xf32>, vector<2x32xf32>, vector<2x32xf32>, vector<2x32xf32>, vector<2x32xf32>, vector<2x32xf32>, vector<2x32xf32> -> vector<16x32xf32>
    %cst_20 = arith.constant dense<0.000000e+00> : vector<16x96xf32>
    %42 = tpu.matmul %41, %37, %cst_20 {dimension_numbers = #tpu.dot_dimension_numbers<[1], [0], [0], [1], [0, 0, 1, 1], [], []>} : vector<16x32xf32>, vector<32x96xf32>, vector<16x96xf32> -> vector<16x96xf32>
    %43 = vector.broadcast %39 : vector<1x96xf32> to vector<16x96xf32>
    %44 = arith.addf %42, %43 : vector<16x96xf32>
    %cst_21 = arith.constant 0.000000e+00 : f32
    %45 = vector.broadcast %cst_21 : f32 to vector<2x32xf32>
    %46 = vector.extract_strided_slice %44 {offsets = [0, 0], sizes = [2, 96], strides = [1, 1]} : vector<16x96xf32> to vector<2x96xf32>
    %cst_22 = arith.constant dense<0.000000e+00> : vector<2x96xf32>
    %47 = tpu.matmul %45, %38, %cst_22 {dimension_numbers = #tpu.dot_dimension_numbers<[1], [0], [0], [1], [0, 0, 1, 1], [], []>} : vector<2x32xf32>, vector<32x96xf32>, vector<2x96xf32> -> vector<2x96xf32>
    %48 = vector.broadcast %40 : vector<1x96xf32> to vector<2x96xf32>
    %49 = arith.addf %47, %48 : vector<2x96xf32>
    %50 = vector.extract_strided_slice %46 {offsets = [0, 0], sizes = [2, 32], strides = [1, 1]} : vector<2x96xf32> to vector<2x32xf32>
    %51 = vector.extract_strided_slice %49 {offsets = [0, 0], sizes = [2, 32], strides = [1, 1]} : vector<2x96xf32> to vector<2x32xf32>
    %52 = arith.addf %50, %51 : vector<2x32xf32>
    %53 = arith.negf %52 : vector<2x32xf32>
    %54 = math.exp %53 : vector<2x32xf32>
    %cst_23 = arith.constant 1.000000e+00 : f32
    %55 = vector.broadcast %cst_23 : f32 to vector<2x32xf32>
    %56 = arith.addf %55, %54 : vector<2x32xf32>
    %57 = arith.divf %55, %56 : vector<2x32xf32>
    %58 = vector.extract_strided_slice %46 {offsets = [0, 32], sizes = [2, 32], strides = [1, 1]} : vector<2x96xf32> to vector<2x32xf32>
    %59 = vector.extract_strided_slice %49 {offsets = [0, 32], sizes = [2, 32], strides = [1, 1]} : vector<2x96xf32> to vector<2x32xf32>
    %60 = arith.addf %58, %59 : vector<2x32xf32>
    %61 = arith.negf %60 : vector<2x32xf32>
    %62 = math.exp %61 : vector<2x32xf32>
    %cst_24 = arith.constant 1.000000e+00 : f32
    %63 = vector.broadcast %cst_24 : f32 to vector<2x32xf32>
    %64 = arith.addf %63, %62 : vector<2x32xf32>
    %65 = arith.divf %63, %64 : vector<2x32xf32>
    %66 = vector.extract_strided_slice %46 {offsets = [0, 64], sizes = [2, 32], strides = [1, 1]} : vector<2x96xf32> to vector<2x32xf32>
    %67 = vector.extract_strided_slice %49 {offsets = [0, 64], sizes = [2, 32], strides = [1, 1]} : vector<2x96xf32> to vector<2x32xf32>
    %68 = arith.mulf %57, %67 : vector<2x32xf32>
    %69 = arith.addf %66, %68 : vector<2x32xf32>
    %70 = math.tanh %69 : vector<2x32xf32>
    %cst_25 = arith.constant 1.000000e+00 : f32
    %71 = vector.broadcast %cst_25 : f32 to vector<2x32xf32>
    %72 = arith.subf %71, %65 : vector<2x32xf32>
    %73 = arith.mulf %72, %70 : vector<2x32xf32>
    %74 = arith.mulf %65, %45 : vector<2x32xf32>
    %75 = arith.addf %73, %74 : vector<2x32xf32>
    %76 = vector.extract_strided_slice %44 {offsets = [2, 0], sizes = [2, 96], strides = [1, 1]} : vector<16x96xf32> to vector<2x96xf32>
    %cst_26 = arith.constant dense<0.000000e+00> : vector<2x96xf32>
    %77 = tpu.matmul %75, %38, %cst_26 {dimension_numbers = #tpu.dot_dimension_numbers<[1], [0], [0], [1], [0, 0, 1, 1], [], []>} : vector<2x32xf32>, vector<32x96xf32>, vector<2x96xf32> -> vector<2x96xf32>
    %78 = vector.broadcast %40 : vector<1x96xf32> to vector<2x96xf32>
    %79 = arith.addf %77, %78 : vector<2x96xf32>
    %80 = vector.extract_strided_slice %76 {offsets = [0, 0], sizes = [2, 32], strides = [1, 1]} : vector<2x96xf32> to vector<2x32xf32>
    %81 = vector.extract_strided_slice %79 {offsets = [0, 0], sizes = [2, 32], strides = [1, 1]} : vector<2x96xf32> to vector<2x32xf32>
    %82 = arith.addf %80, %81 : vector<2x32xf32>
    %83 = arith.negf %82 : vector<2x32xf32>
    %84 = math.exp %83 : vector<2x32xf32>
    %cst_27 = arith.constant 1.000000e+00 : f32
    %85 = vector.broadcast %cst_27 : f32 to vector<2x32xf32>
    %86 = arith.addf %85, %84 : vector<2x32xf32>
    %87 = arith.divf %85, %86 : vector<2x32xf32>
    %88 = vector.extract_strided_slice %76 {offsets = [0, 32], sizes = [2, 32], strides = [1, 1]} : vector<2x96xf32> to vector<2x32xf32>
    %89 = vector.extract_strided_slice %79 {offsets = [0, 32], sizes = [2, 32], strides = [1, 1]} : vector<2x96xf32> to vector<2x32xf32>
    %90 = arith.addf %88, %89 : vector<2x32xf32>
    %91 = arith.negf %90 : vector<2x32xf32>
    %92 = math.exp %91 : vector<2x32xf32>
    %cst_28 = arith.constant 1.000000e+00 : f32
    %93 = vector.broadcast %cst_28 : f32 to vector<2x32xf32>
    %94 = arith.addf %93, %92 : vector<2x32xf32>
    %95 = arith.divf %93, %94 : vector<2x32xf32>
    %96 = vector.extract_strided_slice %76 {offsets = [0, 64], sizes = [2, 32], strides = [1, 1]} : vector<2x96xf32> to vector<2x32xf32>
    %97 = vector.extract_strided_slice %79 {offsets = [0, 64], sizes = [2, 32], strides = [1, 1]} : vector<2x96xf32> to vector<2x32xf32>
    %98 = arith.mulf %87, %97 : vector<2x32xf32>
    %99 = arith.addf %96, %98 : vector<2x32xf32>
    %100 = math.tanh %99 : vector<2x32xf32>
    %cst_29 = arith.constant 1.000000e+00 : f32
    %101 = vector.broadcast %cst_29 : f32 to vector<2x32xf32>
    %102 = arith.subf %101, %95 : vector<2x32xf32>
    %103 = arith.mulf %102, %100 : vector<2x32xf32>
    %104 = arith.mulf %95, %75 : vector<2x32xf32>
    %105 = arith.addf %103, %104 : vector<2x32xf32>
    %106 = vector.extract_strided_slice %44 {offsets = [4, 0], sizes = [2, 96], strides = [1, 1]} : vector<16x96xf32> to vector<2x96xf32>
    %cst_30 = arith.constant dense<0.000000e+00> : vector<2x96xf32>
    %107 = tpu.matmul %105, %38, %cst_30 {dimension_numbers = #tpu.dot_dimension_numbers<[1], [0], [0], [1], [0, 0, 1, 1], [], []>} : vector<2x32xf32>, vector<32x96xf32>, vector<2x96xf32> -> vector<2x96xf32>
    %108 = vector.broadcast %40 : vector<1x96xf32> to vector<2x96xf32>
    %109 = arith.addf %107, %108 : vector<2x96xf32>
    %110 = vector.extract_strided_slice %106 {offsets = [0, 0], sizes = [2, 32], strides = [1, 1]} : vector<2x96xf32> to vector<2x32xf32>
    %111 = vector.extract_strided_slice %109 {offsets = [0, 0], sizes = [2, 32], strides = [1, 1]} : vector<2x96xf32> to vector<2x32xf32>
    %112 = arith.addf %110, %111 : vector<2x32xf32>
    %113 = arith.negf %112 : vector<2x32xf32>
    %114 = math.exp %113 : vector<2x32xf32>
    %cst_31 = arith.constant 1.000000e+00 : f32
    %115 = vector.broadcast %cst_31 : f32 to vector<2x32xf32>
    %116 = arith.addf %115, %114 : vector<2x32xf32>
    %117 = arith.divf %115, %116 : vector<2x32xf32>
    %118 = vector.extract_strided_slice %106 {offsets = [0, 32], sizes = [2, 32], strides = [1, 1]} : vector<2x96xf32> to vector<2x32xf32>
    %119 = vector.extract_strided_slice %109 {offsets = [0, 32], sizes = [2, 32], strides = [1, 1]} : vector<2x96xf32> to vector<2x32xf32>
    %120 = arith.addf %118, %119 : vector<2x32xf32>
    %121 = arith.negf %120 : vector<2x32xf32>
    %122 = math.exp %121 : vector<2x32xf32>
    %cst_32 = arith.constant 1.000000e+00 : f32
    %123 = vector.broadcast %cst_32 : f32 to vector<2x32xf32>
    %124 = arith.addf %123, %122 : vector<2x32xf32>
    %125 = arith.divf %123, %124 : vector<2x32xf32>
    %126 = vector.extract_strided_slice %106 {offsets = [0, 64], sizes = [2, 32], strides = [1, 1]} : vector<2x96xf32> to vector<2x32xf32>
    %127 = vector.extract_strided_slice %109 {offsets = [0, 64], sizes = [2, 32], strides = [1, 1]} : vector<2x96xf32> to vector<2x32xf32>
    %128 = arith.mulf %117, %127 : vector<2x32xf32>
    %129 = arith.addf %126, %128 : vector<2x32xf32>
    %130 = math.tanh %129 : vector<2x32xf32>
    %cst_33 = arith.constant 1.000000e+00 : f32
    %131 = vector.broadcast %cst_33 : f32 to vector<2x32xf32>
    %132 = arith.subf %131, %125 : vector<2x32xf32>
    %133 = arith.mulf %132, %130 : vector<2x32xf32>
    %134 = arith.mulf %125, %105 : vector<2x32xf32>
    %135 = arith.addf %133, %134 : vector<2x32xf32>
    %136 = vector.extract_strided_slice %44 {offsets = [6, 0], sizes = [2, 96], strides = [1, 1]} : vector<16x96xf32> to vector<2x96xf32>
    %cst_34 = arith.constant dense<0.000000e+00> : vector<2x96xf32>
    %137 = tpu.matmul %135, %38, %cst_34 {dimension_numbers = #tpu.dot_dimension_numbers<[1], [0], [0], [1], [0, 0, 1, 1], [], []>} : vector<2x32xf32>, vector<32x96xf32>, vector<2x96xf32> -> vector<2x96xf32>
    %138 = vector.broadcast %40 : vector<1x96xf32> to vector<2x96xf32>
    %139 = arith.addf %137, %138 : vector<2x96xf32>
    %140 = vector.extract_strided_slice %136 {offsets = [0, 0], sizes = [2, 32], strides = [1, 1]} : vector<2x96xf32> to vector<2x32xf32>
    %141 = vector.extract_strided_slice %139 {offsets = [0, 0], sizes = [2, 32], strides = [1, 1]} : vector<2x96xf32> to vector<2x32xf32>
    %142 = arith.addf %140, %141 : vector<2x32xf32>
    %143 = arith.negf %142 : vector<2x32xf32>
    %144 = math.exp %143 : vector<2x32xf32>
    %cst_35 = arith.constant 1.000000e+00 : f32
    %145 = vector.broadcast %cst_35 : f32 to vector<2x32xf32>
    %146 = arith.addf %145, %144 : vector<2x32xf32>
    %147 = arith.divf %145, %146 : vector<2x32xf32>
    %148 = vector.extract_strided_slice %136 {offsets = [0, 32], sizes = [2, 32], strides = [1, 1]} : vector<2x96xf32> to vector<2x32xf32>
    %149 = vector.extract_strided_slice %139 {offsets = [0, 32], sizes = [2, 32], strides = [1, 1]} : vector<2x96xf32> to vector<2x32xf32>
    %150 = arith.addf %148, %149 : vector<2x32xf32>
    %151 = arith.negf %150 : vector<2x32xf32>
    %152 = math.exp %151 : vector<2x32xf32>
    %cst_36 = arith.constant 1.000000e+00 : f32
    %153 = vector.broadcast %cst_36 : f32 to vector<2x32xf32>
    %154 = arith.addf %153, %152 : vector<2x32xf32>
    %155 = arith.divf %153, %154 : vector<2x32xf32>
    %156 = vector.extract_strided_slice %136 {offsets = [0, 64], sizes = [2, 32], strides = [1, 1]} : vector<2x96xf32> to vector<2x32xf32>
    %157 = vector.extract_strided_slice %139 {offsets = [0, 64], sizes = [2, 32], strides = [1, 1]} : vector<2x96xf32> to vector<2x32xf32>
    %158 = arith.mulf %147, %157 : vector<2x32xf32>
    %159 = arith.addf %156, %158 : vector<2x32xf32>
    %160 = math.tanh %159 : vector<2x32xf32>
    %cst_37 = arith.constant 1.000000e+00 : f32
    %161 = vector.broadcast %cst_37 : f32 to vector<2x32xf32>
    %162 = arith.subf %161, %155 : vector<2x32xf32>
    %163 = arith.mulf %162, %160 : vector<2x32xf32>
    %164 = arith.mulf %155, %135 : vector<2x32xf32>
    %165 = arith.addf %163, %164 : vector<2x32xf32>
    %166 = vector.extract_strided_slice %44 {offsets = [8, 0], sizes = [2, 96], strides = [1, 1]} : vector<16x96xf32> to vector<2x96xf32>
    %cst_38 = arith.constant dense<0.000000e+00> : vector<2x96xf32>
    %167 = tpu.matmul %165, %38, %cst_38 {dimension_numbers = #tpu.dot_dimension_numbers<[1], [0], [0], [1], [0, 0, 1, 1], [], []>} : vector<2x32xf32>, vector<32x96xf32>, vector<2x96xf32> -> vector<2x96xf32>
    %168 = vector.broadcast %40 : vector<1x96xf32> to vector<2x96xf32>
    %169 = arith.addf %167, %168 : vector<2x96xf32>
    %170 = vector.extract_strided_slice %166 {offsets = [0, 0], sizes = [2, 32], strides = [1, 1]} : vector<2x96xf32> to vector<2x32xf32>
    %171 = vector.extract_strided_slice %169 {offsets = [0, 0], sizes = [2, 32], strides = [1, 1]} : vector<2x96xf32> to vector<2x32xf32>
    %172 = arith.addf %170, %171 : vector<2x32xf32>
    %173 = arith.negf %172 : vector<2x32xf32>
    %174 = math.exp %173 : vector<2x32xf32>
    %cst_39 = arith.constant 1.000000e+00 : f32
    %175 = vector.broadcast %cst_39 : f32 to vector<2x32xf32>
    %176 = arith.addf %175, %174 : vector<2x32xf32>
    %177 = arith.divf %175, %176 : vector<2x32xf32>
    %178 = vector.extract_strided_slice %166 {offsets = [0, 32], sizes = [2, 32], strides = [1, 1]} : vector<2x96xf32> to vector<2x32xf32>
    %179 = vector.extract_strided_slice %169 {offsets = [0, 32], sizes = [2, 32], strides = [1, 1]} : vector<2x96xf32> to vector<2x32xf32>
    %180 = arith.addf %178, %179 : vector<2x32xf32>
    %181 = arith.negf %180 : vector<2x32xf32>
    %182 = math.exp %181 : vector<2x32xf32>
    %cst_40 = arith.constant 1.000000e+00 : f32
    %183 = vector.broadcast %cst_40 : f32 to vector<2x32xf32>
    %184 = arith.addf %183, %182 : vector<2x32xf32>
    %185 = arith.divf %183, %184 : vector<2x32xf32>
    %186 = vector.extract_strided_slice %166 {offsets = [0, 64], sizes = [2, 32], strides = [1, 1]} : vector<2x96xf32> to vector<2x32xf32>
    %187 = vector.extract_strided_slice %169 {offsets = [0, 64], sizes = [2, 32], strides = [1, 1]} : vector<2x96xf32> to vector<2x32xf32>
    %188 = arith.mulf %177, %187 : vector<2x32xf32>
    %189 = arith.addf %186, %188 : vector<2x32xf32>
    %190 = math.tanh %189 : vector<2x32xf32>
    %cst_41 = arith.constant 1.000000e+00 : f32
    %191 = vector.broadcast %cst_41 : f32 to vector<2x32xf32>
    %192 = arith.subf %191, %185 : vector<2x32xf32>
    %193 = arith.mulf %192, %190 : vector<2x32xf32>
    %194 = arith.mulf %185, %165 : vector<2x32xf32>
    %195 = arith.addf %193, %194 : vector<2x32xf32>
    %196 = vector.extract_strided_slice %44 {offsets = [10, 0], sizes = [2, 96], strides = [1, 1]} : vector<16x96xf32> to vector<2x96xf32>
    %cst_42 = arith.constant dense<0.000000e+00> : vector<2x96xf32>
    %197 = tpu.matmul %195, %38, %cst_42 {dimension_numbers = #tpu.dot_dimension_numbers<[1], [0], [0], [1], [0, 0, 1, 1], [], []>} : vector<2x32xf32>, vector<32x96xf32>, vector<2x96xf32> -> vector<2x96xf32>
    %198 = vector.broadcast %40 : vector<1x96xf32> to vector<2x96xf32>
    %199 = arith.addf %197, %198 : vector<2x96xf32>
    %200 = vector.extract_strided_slice %196 {offsets = [0, 0], sizes = [2, 32], strides = [1, 1]} : vector<2x96xf32> to vector<2x32xf32>
    %201 = vector.extract_strided_slice %199 {offsets = [0, 0], sizes = [2, 32], strides = [1, 1]} : vector<2x96xf32> to vector<2x32xf32>
    %202 = arith.addf %200, %201 : vector<2x32xf32>
    %203 = arith.negf %202 : vector<2x32xf32>
    %204 = math.exp %203 : vector<2x32xf32>
    %cst_43 = arith.constant 1.000000e+00 : f32
    %205 = vector.broadcast %cst_43 : f32 to vector<2x32xf32>
    %206 = arith.addf %205, %204 : vector<2x32xf32>
    %207 = arith.divf %205, %206 : vector<2x32xf32>
    %208 = vector.extract_strided_slice %196 {offsets = [0, 32], sizes = [2, 32], strides = [1, 1]} : vector<2x96xf32> to vector<2x32xf32>
    %209 = vector.extract_strided_slice %199 {offsets = [0, 32], sizes = [2, 32], strides = [1, 1]} : vector<2x96xf32> to vector<2x32xf32>
    %210 = arith.addf %208, %209 : vector<2x32xf32>
    %211 = arith.negf %210 : vector<2x32xf32>
    %212 = math.exp %211 : vector<2x32xf32>
    %cst_44 = arith.constant 1.000000e+00 : f32
    %213 = vector.broadcast %cst_44 : f32 to vector<2x32xf32>
    %214 = arith.addf %213, %212 : vector<2x32xf32>
    %215 = arith.divf %213, %214 : vector<2x32xf32>
    %216 = vector.extract_strided_slice %196 {offsets = [0, 64], sizes = [2, 32], strides = [1, 1]} : vector<2x96xf32> to vector<2x32xf32>
    %217 = vector.extract_strided_slice %199 {offsets = [0, 64], sizes = [2, 32], strides = [1, 1]} : vector<2x96xf32> to vector<2x32xf32>
    %218 = arith.mulf %207, %217 : vector<2x32xf32>
    %219 = arith.addf %216, %218 : vector<2x32xf32>
    %220 = math.tanh %219 : vector<2x32xf32>
    %cst_45 = arith.constant 1.000000e+00 : f32
    %221 = vector.broadcast %cst_45 : f32 to vector<2x32xf32>
    %222 = arith.subf %221, %215 : vector<2x32xf32>
    %223 = arith.mulf %222, %220 : vector<2x32xf32>
    %224 = arith.mulf %215, %195 : vector<2x32xf32>
    %225 = arith.addf %223, %224 : vector<2x32xf32>
    %226 = vector.extract_strided_slice %44 {offsets = [12, 0], sizes = [2, 96], strides = [1, 1]} : vector<16x96xf32> to vector<2x96xf32>
    %cst_46 = arith.constant dense<0.000000e+00> : vector<2x96xf32>
    %227 = tpu.matmul %225, %38, %cst_46 {dimension_numbers = #tpu.dot_dimension_numbers<[1], [0], [0], [1], [0, 0, 1, 1], [], []>} : vector<2x32xf32>, vector<32x96xf32>, vector<2x96xf32> -> vector<2x96xf32>
    %228 = vector.broadcast %40 : vector<1x96xf32> to vector<2x96xf32>
    %229 = arith.addf %227, %228 : vector<2x96xf32>
    %230 = vector.extract_strided_slice %226 {offsets = [0, 0], sizes = [2, 32], strides = [1, 1]} : vector<2x96xf32> to vector<2x32xf32>
    %231 = vector.extract_strided_slice %229 {offsets = [0, 0], sizes = [2, 32], strides = [1, 1]} : vector<2x96xf32> to vector<2x32xf32>
    %232 = arith.addf %230, %231 : vector<2x32xf32>
    %233 = arith.negf %232 : vector<2x32xf32>
    %234 = math.exp %233 : vector<2x32xf32>
    %cst_47 = arith.constant 1.000000e+00 : f32
    %235 = vector.broadcast %cst_47 : f32 to vector<2x32xf32>
    %236 = arith.addf %235, %234 : vector<2x32xf32>
    %237 = arith.divf %235, %236 : vector<2x32xf32>
    %238 = vector.extract_strided_slice %226 {offsets = [0, 32], sizes = [2, 32], strides = [1, 1]} : vector<2x96xf32> to vector<2x32xf32>
    %239 = vector.extract_strided_slice %229 {offsets = [0, 32], sizes = [2, 32], strides = [1, 1]} : vector<2x96xf32> to vector<2x32xf32>
    %240 = arith.addf %238, %239 : vector<2x32xf32>
    %241 = arith.negf %240 : vector<2x32xf32>
    %242 = math.exp %241 : vector<2x32xf32>
    %cst_48 = arith.constant 1.000000e+00 : f32
    %243 = vector.broadcast %cst_48 : f32 to vector<2x32xf32>
    %244 = arith.addf %243, %242 : vector<2x32xf32>
    %245 = arith.divf %243, %244 : vector<2x32xf32>
    %246 = vector.extract_strided_slice %226 {offsets = [0, 64], sizes = [2, 32], strides = [1, 1]} : vector<2x96xf32> to vector<2x32xf32>
    %247 = vector.extract_strided_slice %229 {offsets = [0, 64], sizes = [2, 32], strides = [1, 1]} : vector<2x96xf32> to vector<2x32xf32>
    %248 = arith.mulf %237, %247 : vector<2x32xf32>
    %249 = arith.addf %246, %248 : vector<2x32xf32>
    %250 = math.tanh %249 : vector<2x32xf32>
    %cst_49 = arith.constant 1.000000e+00 : f32
    %251 = vector.broadcast %cst_49 : f32 to vector<2x32xf32>
    %252 = arith.subf %251, %245 : vector<2x32xf32>
    %253 = arith.mulf %252, %250 : vector<2x32xf32>
    %254 = arith.mulf %245, %225 : vector<2x32xf32>
    %255 = arith.addf %253, %254 : vector<2x32xf32>
    %256 = vector.extract_strided_slice %44 {offsets = [14, 0], sizes = [2, 96], strides = [1, 1]} : vector<16x96xf32> to vector<2x96xf32>
    %cst_50 = arith.constant dense<0.000000e+00> : vector<2x96xf32>
    %257 = tpu.matmul %255, %38, %cst_50 {dimension_numbers = #tpu.dot_dimension_numbers<[1], [0], [0], [1], [0, 0, 1, 1], [], []>} : vector<2x32xf32>, vector<32x96xf32>, vector<2x96xf32> -> vector<2x96xf32>
    %258 = vector.broadcast %40 : vector<1x96xf32> to vector<2x96xf32>
    %259 = arith.addf %257, %258 : vector<2x96xf32>
    %260 = vector.extract_strided_slice %256 {offsets = [0, 0], sizes = [2, 32], strides = [1, 1]} : vector<2x96xf32> to vector<2x32xf32>
    %261 = vector.extract_strided_slice %259 {offsets = [0, 0], sizes = [2, 32], strides = [1, 1]} : vector<2x96xf32> to vector<2x32xf32>
    %262 = arith.addf %260, %261 : vector<2x32xf32>
    %263 = arith.negf %262 : vector<2x32xf32>
    %264 = math.exp %263 : vector<2x32xf32>
    %cst_51 = arith.constant 1.000000e+00 : f32
    %265 = vector.broadcast %cst_51 : f32 to vector<2x32xf32>
    %266 = arith.addf %265, %264 : vector<2x32xf32>
    %267 = arith.divf %265, %266 : vector<2x32xf32>
    %268 = vector.extract_strided_slice %256 {offsets = [0, 32], sizes = [2, 32], strides = [1, 1]} : vector<2x96xf32> to vector<2x32xf32>
    %269 = vector.extract_strided_slice %259 {offsets = [0, 32], sizes = [2, 32], strides = [1, 1]} : vector<2x96xf32> to vector<2x32xf32>
    %270 = arith.addf %268, %269 : vector<2x32xf32>
    %271 = arith.negf %270 : vector<2x32xf32>
    %272 = math.exp %271 : vector<2x32xf32>
    %cst_52 = arith.constant 1.000000e+00 : f32
    %273 = vector.broadcast %cst_52 : f32 to vector<2x32xf32>
    %274 = arith.addf %273, %272 : vector<2x32xf32>
    %275 = arith.divf %273, %274 : vector<2x32xf32>
    %276 = vector.extract_strided_slice %256 {offsets = [0, 64], sizes = [2, 32], strides = [1, 1]} : vector<2x96xf32> to vector<2x32xf32>
    %277 = vector.extract_strided_slice %259 {offsets = [0, 64], sizes = [2, 32], strides = [1, 1]} : vector<2x96xf32> to vector<2x32xf32>
    %278 = arith.mulf %267, %277 : vector<2x32xf32>
    %279 = arith.addf %276, %278 : vector<2x32xf32>
    %280 = math.tanh %279 : vector<2x32xf32>
    %cst_53 = arith.constant 1.000000e+00 : f32
    %281 = vector.broadcast %cst_53 : f32 to vector<2x32xf32>
    %282 = arith.subf %281, %275 : vector<2x32xf32>
    %283 = arith.mulf %282, %280 : vector<2x32xf32>
    %284 = arith.mulf %275, %255 : vector<2x32xf32>
    %285 = arith.addf %283, %284 : vector<2x32xf32>
    %c0_54 = arith.constant 0 : index
    %c0_55 = arith.constant 0 : index
    %286 = vector.load %arg9[%c0_54, %c0_55] : memref<32x96xf32, #tpu.memory_space<vmem>>, vector<32x96xf32>
    %c0_56 = arith.constant 0 : index
    %c0_57 = arith.constant 0 : index
    %287 = vector.load %arg10[%c0_56, %c0_57] : memref<32x96xf32, #tpu.memory_space<vmem>>, vector<32x96xf32>
    %c0_58 = arith.constant 0 : index
    %c0_59 = arith.constant 0 : index
    %288 = vector.load %arg11[%c0_58, %c0_59] : memref<1x96xf32, #tpu.memory_space<vmem>>, vector<1x96xf32>
    %c0_60 = arith.constant 0 : index
    %c0_61 = arith.constant 0 : index
    %289 = vector.load %arg12[%c0_60, %c0_61] : memref<1x96xf32, #tpu.memory_space<vmem>>, vector<1x96xf32>
    %290 = tpu.concatenate %75, %105, %135, %165, %195, %225, %255, %285 in 0 : vector<2x32xf32>, vector<2x32xf32>, vector<2x32xf32>, vector<2x32xf32>, vector<2x32xf32>, vector<2x32xf32>, vector<2x32xf32>, vector<2x32xf32> -> vector<16x32xf32>
    %cst_62 = arith.constant dense<0.000000e+00> : vector<16x96xf32>
    %291 = tpu.matmul %290, %286, %cst_62 {dimension_numbers = #tpu.dot_dimension_numbers<[1], [0], [0], [1], [0, 0, 1, 1], [], []>} : vector<16x32xf32>, vector<32x96xf32>, vector<16x96xf32> -> vector<16x96xf32>
    %292 = vector.broadcast %288 : vector<1x96xf32> to vector<16x96xf32>
    %293 = arith.addf %291, %292 : vector<16x96xf32>
    %cst_63 = arith.constant 0.000000e+00 : f32
    %294 = vector.broadcast %cst_63 : f32 to vector<2x32xf32>
    %295 = vector.extract_strided_slice %293 {offsets = [0, 0], sizes = [2, 96], strides = [1, 1]} : vector<16x96xf32> to vector<2x96xf32>
    %cst_64 = arith.constant dense<0.000000e+00> : vector<2x96xf32>
    %296 = tpu.matmul %294, %287, %cst_64 {dimension_numbers = #tpu.dot_dimension_numbers<[1], [0], [0], [1], [0, 0, 1, 1], [], []>} : vector<2x32xf32>, vector<32x96xf32>, vector<2x96xf32> -> vector<2x96xf32>
    %297 = vector.broadcast %289 : vector<1x96xf32> to vector<2x96xf32>
    %298 = arith.addf %296, %297 : vector<2x96xf32>
    %299 = vector.extract_strided_slice %295 {offsets = [0, 0], sizes = [2, 32], strides = [1, 1]} : vector<2x96xf32> to vector<2x32xf32>
    %300 = vector.extract_strided_slice %298 {offsets = [0, 0], sizes = [2, 32], strides = [1, 1]} : vector<2x96xf32> to vector<2x32xf32>
    %301 = arith.addf %299, %300 : vector<2x32xf32>
    %302 = arith.negf %301 : vector<2x32xf32>
    %303 = math.exp %302 : vector<2x32xf32>
    %cst_65 = arith.constant 1.000000e+00 : f32
    %304 = vector.broadcast %cst_65 : f32 to vector<2x32xf32>
    %305 = arith.addf %304, %303 : vector<2x32xf32>
    %306 = arith.divf %304, %305 : vector<2x32xf32>
    %307 = vector.extract_strided_slice %295 {offsets = [0, 32], sizes = [2, 32], strides = [1, 1]} : vector<2x96xf32> to vector<2x32xf32>
    %308 = vector.extract_strided_slice %298 {offsets = [0, 32], sizes = [2, 32], strides = [1, 1]} : vector<2x96xf32> to vector<2x32xf32>
    %309 = arith.addf %307, %308 : vector<2x32xf32>
    %310 = arith.negf %309 : vector<2x32xf32>
    %311 = math.exp %310 : vector<2x32xf32>
    %cst_66 = arith.constant 1.000000e+00 : f32
    %312 = vector.broadcast %cst_66 : f32 to vector<2x32xf32>
    %313 = arith.addf %312, %311 : vector<2x32xf32>
    %314 = arith.divf %312, %313 : vector<2x32xf32>
    %315 = vector.extract_strided_slice %295 {offsets = [0, 64], sizes = [2, 32], strides = [1, 1]} : vector<2x96xf32> to vector<2x32xf32>
    %316 = vector.extract_strided_slice %298 {offsets = [0, 64], sizes = [2, 32], strides = [1, 1]} : vector<2x96xf32> to vector<2x32xf32>
    %317 = arith.mulf %306, %316 : vector<2x32xf32>
    %318 = arith.addf %315, %317 : vector<2x32xf32>
    %319 = math.tanh %318 : vector<2x32xf32>
    %cst_67 = arith.constant 1.000000e+00 : f32
    %320 = vector.broadcast %cst_67 : f32 to vector<2x32xf32>
    %321 = arith.subf %320, %314 : vector<2x32xf32>
    %322 = arith.mulf %321, %319 : vector<2x32xf32>
    %323 = arith.mulf %314, %294 : vector<2x32xf32>
    %324 = arith.addf %322, %323 : vector<2x32xf32>
    %325 = vector.extract_strided_slice %293 {offsets = [2, 0], sizes = [2, 96], strides = [1, 1]} : vector<16x96xf32> to vector<2x96xf32>
    %cst_68 = arith.constant dense<0.000000e+00> : vector<2x96xf32>
    %326 = tpu.matmul %324, %287, %cst_68 {dimension_numbers = #tpu.dot_dimension_numbers<[1], [0], [0], [1], [0, 0, 1, 1], [], []>} : vector<2x32xf32>, vector<32x96xf32>, vector<2x96xf32> -> vector<2x96xf32>
    %327 = vector.broadcast %289 : vector<1x96xf32> to vector<2x96xf32>
    %328 = arith.addf %326, %327 : vector<2x96xf32>
    %329 = vector.extract_strided_slice %325 {offsets = [0, 0], sizes = [2, 32], strides = [1, 1]} : vector<2x96xf32> to vector<2x32xf32>
    %330 = vector.extract_strided_slice %328 {offsets = [0, 0], sizes = [2, 32], strides = [1, 1]} : vector<2x96xf32> to vector<2x32xf32>
    %331 = arith.addf %329, %330 : vector<2x32xf32>
    %332 = arith.negf %331 : vector<2x32xf32>
    %333 = math.exp %332 : vector<2x32xf32>
    %cst_69 = arith.constant 1.000000e+00 : f32
    %334 = vector.broadcast %cst_69 : f32 to vector<2x32xf32>
    %335 = arith.addf %334, %333 : vector<2x32xf32>
    %336 = arith.divf %334, %335 : vector<2x32xf32>
    %337 = vector.extract_strided_slice %325 {offsets = [0, 32], sizes = [2, 32], strides = [1, 1]} : vector<2x96xf32> to vector<2x32xf32>
    %338 = vector.extract_strided_slice %328 {offsets = [0, 32], sizes = [2, 32], strides = [1, 1]} : vector<2x96xf32> to vector<2x32xf32>
    %339 = arith.addf %337, %338 : vector<2x32xf32>
    %340 = arith.negf %339 : vector<2x32xf32>
    %341 = math.exp %340 : vector<2x32xf32>
    %cst_70 = arith.constant 1.000000e+00 : f32
    %342 = vector.broadcast %cst_70 : f32 to vector<2x32xf32>
    %343 = arith.addf %342, %341 : vector<2x32xf32>
    %344 = arith.divf %342, %343 : vector<2x32xf32>
    %345 = vector.extract_strided_slice %325 {offsets = [0, 64], sizes = [2, 32], strides = [1, 1]} : vector<2x96xf32> to vector<2x32xf32>
    %346 = vector.extract_strided_slice %328 {offsets = [0, 64], sizes = [2, 32], strides = [1, 1]} : vector<2x96xf32> to vector<2x32xf32>
    %347 = arith.mulf %336, %346 : vector<2x32xf32>
    %348 = arith.addf %345, %347 : vector<2x32xf32>
    %349 = math.tanh %348 : vector<2x32xf32>
    %cst_71 = arith.constant 1.000000e+00 : f32
    %350 = vector.broadcast %cst_71 : f32 to vector<2x32xf32>
    %351 = arith.subf %350, %344 : vector<2x32xf32>
    %352 = arith.mulf %351, %349 : vector<2x32xf32>
    %353 = arith.mulf %344, %324 : vector<2x32xf32>
    %354 = arith.addf %352, %353 : vector<2x32xf32>
    %355 = vector.extract_strided_slice %293 {offsets = [4, 0], sizes = [2, 96], strides = [1, 1]} : vector<16x96xf32> to vector<2x96xf32>
    %cst_72 = arith.constant dense<0.000000e+00> : vector<2x96xf32>
    %356 = tpu.matmul %354, %287, %cst_72 {dimension_numbers = #tpu.dot_dimension_numbers<[1], [0], [0], [1], [0, 0, 1, 1], [], []>} : vector<2x32xf32>, vector<32x96xf32>, vector<2x96xf32> -> vector<2x96xf32>
    %357 = vector.broadcast %289 : vector<1x96xf32> to vector<2x96xf32>
    %358 = arith.addf %356, %357 : vector<2x96xf32>
    %359 = vector.extract_strided_slice %355 {offsets = [0, 0], sizes = [2, 32], strides = [1, 1]} : vector<2x96xf32> to vector<2x32xf32>
    %360 = vector.extract_strided_slice %358 {offsets = [0, 0], sizes = [2, 32], strides = [1, 1]} : vector<2x96xf32> to vector<2x32xf32>
    %361 = arith.addf %359, %360 : vector<2x32xf32>
    %362 = arith.negf %361 : vector<2x32xf32>
    %363 = math.exp %362 : vector<2x32xf32>
    %cst_73 = arith.constant 1.000000e+00 : f32
    %364 = vector.broadcast %cst_73 : f32 to vector<2x32xf32>
    %365 = arith.addf %364, %363 : vector<2x32xf32>
    %366 = arith.divf %364, %365 : vector<2x32xf32>
    %367 = vector.extract_strided_slice %355 {offsets = [0, 32], sizes = [2, 32], strides = [1, 1]} : vector<2x96xf32> to vector<2x32xf32>
    %368 = vector.extract_strided_slice %358 {offsets = [0, 32], sizes = [2, 32], strides = [1, 1]} : vector<2x96xf32> to vector<2x32xf32>
    %369 = arith.addf %367, %368 : vector<2x32xf32>
    %370 = arith.negf %369 : vector<2x32xf32>
    %371 = math.exp %370 : vector<2x32xf32>
    %cst_74 = arith.constant 1.000000e+00 : f32
    %372 = vector.broadcast %cst_74 : f32 to vector<2x32xf32>
    %373 = arith.addf %372, %371 : vector<2x32xf32>
    %374 = arith.divf %372, %373 : vector<2x32xf32>
    %375 = vector.extract_strided_slice %355 {offsets = [0, 64], sizes = [2, 32], strides = [1, 1]} : vector<2x96xf32> to vector<2x32xf32>
    %376 = vector.extract_strided_slice %358 {offsets = [0, 64], sizes = [2, 32], strides = [1, 1]} : vector<2x96xf32> to vector<2x32xf32>
    %377 = arith.mulf %366, %376 : vector<2x32xf32>
    %378 = arith.addf %375, %377 : vector<2x32xf32>
    %379 = math.tanh %378 : vector<2x32xf32>
    %cst_75 = arith.constant 1.000000e+00 : f32
    %380 = vector.broadcast %cst_75 : f32 to vector<2x32xf32>
    %381 = arith.subf %380, %374 : vector<2x32xf32>
    %382 = arith.mulf %381, %379 : vector<2x32xf32>
    %383 = arith.mulf %374, %354 : vector<2x32xf32>
    %384 = arith.addf %382, %383 : vector<2x32xf32>
    %385 = vector.extract_strided_slice %293 {offsets = [6, 0], sizes = [2, 96], strides = [1, 1]} : vector<16x96xf32> to vector<2x96xf32>
    %cst_76 = arith.constant dense<0.000000e+00> : vector<2x96xf32>
    %386 = tpu.matmul %384, %287, %cst_76 {dimension_numbers = #tpu.dot_dimension_numbers<[1], [0], [0], [1], [0, 0, 1, 1], [], []>} : vector<2x32xf32>, vector<32x96xf32>, vector<2x96xf32> -> vector<2x96xf32>
    %387 = vector.broadcast %289 : vector<1x96xf32> to vector<2x96xf32>
    %388 = arith.addf %386, %387 : vector<2x96xf32>
    %389 = vector.extract_strided_slice %385 {offsets = [0, 0], sizes = [2, 32], strides = [1, 1]} : vector<2x96xf32> to vector<2x32xf32>
    %390 = vector.extract_strided_slice %388 {offsets = [0, 0], sizes = [2, 32], strides = [1, 1]} : vector<2x96xf32> to vector<2x32xf32>
    %391 = arith.addf %389, %390 : vector<2x32xf32>
    %392 = arith.negf %391 : vector<2x32xf32>
    %393 = math.exp %392 : vector<2x32xf32>
    %cst_77 = arith.constant 1.000000e+00 : f32
    %394 = vector.broadcast %cst_77 : f32 to vector<2x32xf32>
    %395 = arith.addf %394, %393 : vector<2x32xf32>
    %396 = arith.divf %394, %395 : vector<2x32xf32>
    %397 = vector.extract_strided_slice %385 {offsets = [0, 32], sizes = [2, 32], strides = [1, 1]} : vector<2x96xf32> to vector<2x32xf32>
    %398 = vector.extract_strided_slice %388 {offsets = [0, 32], sizes = [2, 32], strides = [1, 1]} : vector<2x96xf32> to vector<2x32xf32>
    %399 = arith.addf %397, %398 : vector<2x32xf32>
    %400 = arith.negf %399 : vector<2x32xf32>
    %401 = math.exp %400 : vector<2x32xf32>
    %cst_78 = arith.constant 1.000000e+00 : f32
    %402 = vector.broadcast %cst_78 : f32 to vector<2x32xf32>
    %403 = arith.addf %402, %401 : vector<2x32xf32>
    %404 = arith.divf %402, %403 : vector<2x32xf32>
    %405 = vector.extract_strided_slice %385 {offsets = [0, 64], sizes = [2, 32], strides = [1, 1]} : vector<2x96xf32> to vector<2x32xf32>
    %406 = vector.extract_strided_slice %388 {offsets = [0, 64], sizes = [2, 32], strides = [1, 1]} : vector<2x96xf32> to vector<2x32xf32>
    %407 = arith.mulf %396, %406 : vector<2x32xf32>
    %408 = arith.addf %405, %407 : vector<2x32xf32>
    %409 = math.tanh %408 : vector<2x32xf32>
    %cst_79 = arith.constant 1.000000e+00 : f32
    %410 = vector.broadcast %cst_79 : f32 to vector<2x32xf32>
    %411 = arith.subf %410, %404 : vector<2x32xf32>
    %412 = arith.mulf %411, %409 : vector<2x32xf32>
    %413 = arith.mulf %404, %384 : vector<2x32xf32>
    %414 = arith.addf %412, %413 : vector<2x32xf32>
    %415 = vector.extract_strided_slice %293 {offsets = [8, 0], sizes = [2, 96], strides = [1, 1]} : vector<16x96xf32> to vector<2x96xf32>
    %cst_80 = arith.constant dense<0.000000e+00> : vector<2x96xf32>
    %416 = tpu.matmul %414, %287, %cst_80 {dimension_numbers = #tpu.dot_dimension_numbers<[1], [0], [0], [1], [0, 0, 1, 1], [], []>} : vector<2x32xf32>, vector<32x96xf32>, vector<2x96xf32> -> vector<2x96xf32>
    %417 = vector.broadcast %289 : vector<1x96xf32> to vector<2x96xf32>
    %418 = arith.addf %416, %417 : vector<2x96xf32>
    %419 = vector.extract_strided_slice %415 {offsets = [0, 0], sizes = [2, 32], strides = [1, 1]} : vector<2x96xf32> to vector<2x32xf32>
    %420 = vector.extract_strided_slice %418 {offsets = [0, 0], sizes = [2, 32], strides = [1, 1]} : vector<2x96xf32> to vector<2x32xf32>
    %421 = arith.addf %419, %420 : vector<2x32xf32>
    %422 = arith.negf %421 : vector<2x32xf32>
    %423 = math.exp %422 : vector<2x32xf32>
    %cst_81 = arith.constant 1.000000e+00 : f32
    %424 = vector.broadcast %cst_81 : f32 to vector<2x32xf32>
    %425 = arith.addf %424, %423 : vector<2x32xf32>
    %426 = arith.divf %424, %425 : vector<2x32xf32>
    %427 = vector.extract_strided_slice %415 {offsets = [0, 32], sizes = [2, 32], strides = [1, 1]} : vector<2x96xf32> to vector<2x32xf32>
    %428 = vector.extract_strided_slice %418 {offsets = [0, 32], sizes = [2, 32], strides = [1, 1]} : vector<2x96xf32> to vector<2x32xf32>
    %429 = arith.addf %427, %428 : vector<2x32xf32>
    %430 = arith.negf %429 : vector<2x32xf32>
    %431 = math.exp %430 : vector<2x32xf32>
    %cst_82 = arith.constant 1.000000e+00 : f32
    %432 = vector.broadcast %cst_82 : f32 to vector<2x32xf32>
    %433 = arith.addf %432, %431 : vector<2x32xf32>
    %434 = arith.divf %432, %433 : vector<2x32xf32>
    %435 = vector.extract_strided_slice %415 {offsets = [0, 64], sizes = [2, 32], strides = [1, 1]} : vector<2x96xf32> to vector<2x32xf32>
    %436 = vector.extract_strided_slice %418 {offsets = [0, 64], sizes = [2, 32], strides = [1, 1]} : vector<2x96xf32> to vector<2x32xf32>
    %437 = arith.mulf %426, %436 : vector<2x32xf32>
    %438 = arith.addf %435, %437 : vector<2x32xf32>
    %439 = math.tanh %438 : vector<2x32xf32>
    %cst_83 = arith.constant 1.000000e+00 : f32
    %440 = vector.broadcast %cst_83 : f32 to vector<2x32xf32>
    %441 = arith.subf %440, %434 : vector<2x32xf32>
    %442 = arith.mulf %441, %439 : vector<2x32xf32>
    %443 = arith.mulf %434, %414 : vector<2x32xf32>
    %444 = arith.addf %442, %443 : vector<2x32xf32>
    %445 = vector.extract_strided_slice %293 {offsets = [10, 0], sizes = [2, 96], strides = [1, 1]} : vector<16x96xf32> to vector<2x96xf32>
    %cst_84 = arith.constant dense<0.000000e+00> : vector<2x96xf32>
    %446 = tpu.matmul %444, %287, %cst_84 {dimension_numbers = #tpu.dot_dimension_numbers<[1], [0], [0], [1], [0, 0, 1, 1], [], []>} : vector<2x32xf32>, vector<32x96xf32>, vector<2x96xf32> -> vector<2x96xf32>
    %447 = vector.broadcast %289 : vector<1x96xf32> to vector<2x96xf32>
    %448 = arith.addf %446, %447 : vector<2x96xf32>
    %449 = vector.extract_strided_slice %445 {offsets = [0, 0], sizes = [2, 32], strides = [1, 1]} : vector<2x96xf32> to vector<2x32xf32>
    %450 = vector.extract_strided_slice %448 {offsets = [0, 0], sizes = [2, 32], strides = [1, 1]} : vector<2x96xf32> to vector<2x32xf32>
    %451 = arith.addf %449, %450 : vector<2x32xf32>
    %452 = arith.negf %451 : vector<2x32xf32>
    %453 = math.exp %452 : vector<2x32xf32>
    %cst_85 = arith.constant 1.000000e+00 : f32
    %454 = vector.broadcast %cst_85 : f32 to vector<2x32xf32>
    %455 = arith.addf %454, %453 : vector<2x32xf32>
    %456 = arith.divf %454, %455 : vector<2x32xf32>
    %457 = vector.extract_strided_slice %445 {offsets = [0, 32], sizes = [2, 32], strides = [1, 1]} : vector<2x96xf32> to vector<2x32xf32>
    %458 = vector.extract_strided_slice %448 {offsets = [0, 32], sizes = [2, 32], strides = [1, 1]} : vector<2x96xf32> to vector<2x32xf32>
    %459 = arith.addf %457, %458 : vector<2x32xf32>
    %460 = arith.negf %459 : vector<2x32xf32>
    %461 = math.exp %460 : vector<2x32xf32>
    %cst_86 = arith.constant 1.000000e+00 : f32
    %462 = vector.broadcast %cst_86 : f32 to vector<2x32xf32>
    %463 = arith.addf %462, %461 : vector<2x32xf32>
    %464 = arith.divf %462, %463 : vector<2x32xf32>
    %465 = vector.extract_strided_slice %445 {offsets = [0, 64], sizes = [2, 32], strides = [1, 1]} : vector<2x96xf32> to vector<2x32xf32>
    %466 = vector.extract_strided_slice %448 {offsets = [0, 64], sizes = [2, 32], strides = [1, 1]} : vector<2x96xf32> to vector<2x32xf32>
    %467 = arith.mulf %456, %466 : vector<2x32xf32>
    %468 = arith.addf %465, %467 : vector<2x32xf32>
    %469 = math.tanh %468 : vector<2x32xf32>
    %cst_87 = arith.constant 1.000000e+00 : f32
    %470 = vector.broadcast %cst_87 : f32 to vector<2x32xf32>
    %471 = arith.subf %470, %464 : vector<2x32xf32>
    %472 = arith.mulf %471, %469 : vector<2x32xf32>
    %473 = arith.mulf %464, %444 : vector<2x32xf32>
    %474 = arith.addf %472, %473 : vector<2x32xf32>
    %475 = vector.extract_strided_slice %293 {offsets = [12, 0], sizes = [2, 96], strides = [1, 1]} : vector<16x96xf32> to vector<2x96xf32>
    %cst_88 = arith.constant dense<0.000000e+00> : vector<2x96xf32>
    %476 = tpu.matmul %474, %287, %cst_88 {dimension_numbers = #tpu.dot_dimension_numbers<[1], [0], [0], [1], [0, 0, 1, 1], [], []>} : vector<2x32xf32>, vector<32x96xf32>, vector<2x96xf32> -> vector<2x96xf32>
    %477 = vector.broadcast %289 : vector<1x96xf32> to vector<2x96xf32>
    %478 = arith.addf %476, %477 : vector<2x96xf32>
    %479 = vector.extract_strided_slice %475 {offsets = [0, 0], sizes = [2, 32], strides = [1, 1]} : vector<2x96xf32> to vector<2x32xf32>
    %480 = vector.extract_strided_slice %478 {offsets = [0, 0], sizes = [2, 32], strides = [1, 1]} : vector<2x96xf32> to vector<2x32xf32>
    %481 = arith.addf %479, %480 : vector<2x32xf32>
    %482 = arith.negf %481 : vector<2x32xf32>
    %483 = math.exp %482 : vector<2x32xf32>
    %cst_89 = arith.constant 1.000000e+00 : f32
    %484 = vector.broadcast %cst_89 : f32 to vector<2x32xf32>
    %485 = arith.addf %484, %483 : vector<2x32xf32>
    %486 = arith.divf %484, %485 : vector<2x32xf32>
    %487 = vector.extract_strided_slice %475 {offsets = [0, 32], sizes = [2, 32], strides = [1, 1]} : vector<2x96xf32> to vector<2x32xf32>
    %488 = vector.extract_strided_slice %478 {offsets = [0, 32], sizes = [2, 32], strides = [1, 1]} : vector<2x96xf32> to vector<2x32xf32>
    %489 = arith.addf %487, %488 : vector<2x32xf32>
    %490 = arith.negf %489 : vector<2x32xf32>
    %491 = math.exp %490 : vector<2x32xf32>
    %cst_90 = arith.constant 1.000000e+00 : f32
    %492 = vector.broadcast %cst_90 : f32 to vector<2x32xf32>
    %493 = arith.addf %492, %491 : vector<2x32xf32>
    %494 = arith.divf %492, %493 : vector<2x32xf32>
    %495 = vector.extract_strided_slice %475 {offsets = [0, 64], sizes = [2, 32], strides = [1, 1]} : vector<2x96xf32> to vector<2x32xf32>
    %496 = vector.extract_strided_slice %478 {offsets = [0, 64], sizes = [2, 32], strides = [1, 1]} : vector<2x96xf32> to vector<2x32xf32>
    %497 = arith.mulf %486, %496 : vector<2x32xf32>
    %498 = arith.addf %495, %497 : vector<2x32xf32>
    %499 = math.tanh %498 : vector<2x32xf32>
    %cst_91 = arith.constant 1.000000e+00 : f32
    %500 = vector.broadcast %cst_91 : f32 to vector<2x32xf32>
    %501 = arith.subf %500, %494 : vector<2x32xf32>
    %502 = arith.mulf %501, %499 : vector<2x32xf32>
    %503 = arith.mulf %494, %474 : vector<2x32xf32>
    %504 = arith.addf %502, %503 : vector<2x32xf32>
    %505 = vector.extract_strided_slice %293 {offsets = [14, 0], sizes = [2, 96], strides = [1, 1]} : vector<16x96xf32> to vector<2x96xf32>
    %cst_92 = arith.constant dense<0.000000e+00> : vector<2x96xf32>
    %506 = tpu.matmul %504, %287, %cst_92 {dimension_numbers = #tpu.dot_dimension_numbers<[1], [0], [0], [1], [0, 0, 1, 1], [], []>} : vector<2x32xf32>, vector<32x96xf32>, vector<2x96xf32> -> vector<2x96xf32>
    %507 = vector.broadcast %289 : vector<1x96xf32> to vector<2x96xf32>
    %508 = arith.addf %506, %507 : vector<2x96xf32>
    %509 = vector.extract_strided_slice %505 {offsets = [0, 0], sizes = [2, 32], strides = [1, 1]} : vector<2x96xf32> to vector<2x32xf32>
    %510 = vector.extract_strided_slice %508 {offsets = [0, 0], sizes = [2, 32], strides = [1, 1]} : vector<2x96xf32> to vector<2x32xf32>
    %511 = arith.addf %509, %510 : vector<2x32xf32>
    %512 = arith.negf %511 : vector<2x32xf32>
    %513 = math.exp %512 : vector<2x32xf32>
    %cst_93 = arith.constant 1.000000e+00 : f32
    %514 = vector.broadcast %cst_93 : f32 to vector<2x32xf32>
    %515 = arith.addf %514, %513 : vector<2x32xf32>
    %516 = arith.divf %514, %515 : vector<2x32xf32>
    %517 = vector.extract_strided_slice %505 {offsets = [0, 32], sizes = [2, 32], strides = [1, 1]} : vector<2x96xf32> to vector<2x32xf32>
    %518 = vector.extract_strided_slice %508 {offsets = [0, 32], sizes = [2, 32], strides = [1, 1]} : vector<2x96xf32> to vector<2x32xf32>
    %519 = arith.addf %517, %518 : vector<2x32xf32>
    %520 = arith.negf %519 : vector<2x32xf32>
    %521 = math.exp %520 : vector<2x32xf32>
    %cst_94 = arith.constant 1.000000e+00 : f32
    %522 = vector.broadcast %cst_94 : f32 to vector<2x32xf32>
    %523 = arith.addf %522, %521 : vector<2x32xf32>
    %524 = arith.divf %522, %523 : vector<2x32xf32>
    %525 = vector.extract_strided_slice %505 {offsets = [0, 64], sizes = [2, 32], strides = [1, 1]} : vector<2x96xf32> to vector<2x32xf32>
    %526 = vector.extract_strided_slice %508 {offsets = [0, 64], sizes = [2, 32], strides = [1, 1]} : vector<2x96xf32> to vector<2x32xf32>
    %527 = arith.mulf %516, %526 : vector<2x32xf32>
    %528 = arith.addf %525, %527 : vector<2x32xf32>
    %529 = math.tanh %528 : vector<2x32xf32>
    %cst_95 = arith.constant 1.000000e+00 : f32
    %530 = vector.broadcast %cst_95 : f32 to vector<2x32xf32>
    %531 = arith.subf %530, %524 : vector<2x32xf32>
    %532 = arith.mulf %531, %529 : vector<2x32xf32>
    %533 = arith.mulf %524, %504 : vector<2x32xf32>
    %534 = arith.addf %532, %533 : vector<2x32xf32>
    %535 = tpu.concatenate %324, %354, %384, %414, %444, %474, %504, %534 in 1 : vector<2x32xf32>, vector<2x32xf32>, vector<2x32xf32>, vector<2x32xf32>, vector<2x32xf32>, vector<2x32xf32>, vector<2x32xf32>, vector<2x32xf32> -> vector<2x256xf32>
    %c0_96 = arith.constant 0 : index
    %c0_97 = arith.constant 0 : index
    %536 = vector.load %arg13[%c0_96, %c0_97] : memref<256x64xf32, #tpu.memory_space<vmem>>, vector<256x64xf32>
    %cst_98 = arith.constant dense<0.000000e+00> : vector<2x64xf32>
    %537 = tpu.matmul %535, %536, %cst_98 {dimension_numbers = #tpu.dot_dimension_numbers<[1], [0], [0], [1], [0, 0, 1, 1], [], []>} : vector<2x256xf32>, vector<256x64xf32>, vector<2x64xf32> -> vector<2x64xf32>
    %c0_99 = arith.constant 0 : index
    %c0_100 = arith.constant 0 : index
    %538 = vector.load %arg14[%c0_99, %c0_100] : memref<1x64xf32, #tpu.memory_space<vmem>>, vector<1x64xf32>
    %539 = vector.broadcast %538 : vector<1x64xf32> to vector<2x64xf32>
    %540 = arith.addf %537, %539 : vector<2x64xf32>
    %cst_101 = arith.constant 0.000000e+00 : f32
    %541 = vector.broadcast %cst_101 : f32 to vector<2x64xf32>
    %542 = arith.maximumf %540, %541 : vector<2x64xf32>
    %c0_102 = arith.constant 0 : index
    %c0_103 = arith.constant 0 : index
    %543 = vector.load %arg15[%c0_102, %c0_103] : memref<64x10xf32, #tpu.memory_space<vmem>>, vector<64x10xf32>
    %cst_104 = arith.constant dense<0.000000e+00> : vector<2x10xf32>
    %544 = tpu.matmul %542, %543, %cst_104 {dimension_numbers = #tpu.dot_dimension_numbers<[1], [0], [0], [1], [0, 0, 1, 1], [], []>} : vector<2x64xf32>, vector<64x10xf32>, vector<2x10xf32> -> vector<2x10xf32>
    %c0_105 = arith.constant 0 : index
    %c0_106 = arith.constant 0 : index
    %545 = vector.load %arg16[%c0_105, %c0_106] : memref<1x10xf32, #tpu.memory_space<vmem>>, vector<1x10xf32>
    %546 = vector.broadcast %545 : vector<1x10xf32> to vector<2x10xf32>
    %547 = arith.addf %544, %546 : vector<2x10xf32>
    %c0_107 = arith.constant 0 : index
    %c0_108 = arith.constant 0 : index
    %548 = vector.load %arg17[%c0_107, %c0_108] : memref<2x10xf32, #tpu.memory_space<vmem>>, vector<2x10xf32>
    tpu.vector_store %arg17[%c0_107, %c0_108], %547 {strides = array<i32>} : memref<2x10xf32, #tpu.memory_space<vmem>>, vector<2x10xf32>,
    return
  }
}

</mosaic_0001>

<bundles_post_ra>
// kernel: timeseries_gru_forward.1
= control target key start
LH: loop header
LB: loop body
LE: loop exit
PB: predicated region body
PF: predicated region fallthrough
CT: control target
= control target key end

     0   :  { %s3613_s0 = inlined_call_operand.vmem [shape: f32[2,8,4], index: 0, kind: input, shape index: {}]   ;;  %s3614_s1 = inlined_call_operand.vmem [shape: f32[1,1,4], index: 1, kind: input, shape index: {}]   ;;  %s3615_s2 = inlined_call_operand.vmem [shape: f32[1,1,4], index: 2, kind: input, shape index: {}]   ;;  %s3616_s3 = inlined_call_operand.vmem [shape: f32[4,32], index: 3, kind: input, shape index: {}]   ;;  %s3617_s4 = inlined_call_operand.vmem [shape: f32[1,32], index: 4, kind: input, shape index: {}]   ;;  %s3618_s5 = inlined_call_operand.vmem [shape: f32[32,96], index: 5, kind: input, shape index: {}]   ;;  %s3619_s6 = inlined_call_operand.vmem [shape: f32[32,96], index: 6, kind: input, shape index: {}]   ;;  %s3620_s7 = inlined_call_operand.vmem [shape: f32[1,96], index: 7, kind: input, shape index: {}]   ;;  %s3621_s8 = inlined_call_operand.vmem [shape: f32[1,96], index: 8, kind: input, shape index: {}]   ;;  %s3622_s9 = inlined_call_operand.vmem [shape: f32[32,96], index: 9, kind: input, shape index: {}]   ;;  %s3623_s10 = inlined_call_operand.vmem [shape: f32[32,96], index: 10, kind: input, shape index: {}]   ;;  %s3624_s11 = inlined_call_operand.vmem [shape: f32[1,96], index: 11, kind: input, shape index: {}]   ;;  %s3625_s12 = inlined_call_operand.vmem [shape: f32[1,96], index: 12, kind: input, shape index: {}]   ;;  %s3626_s13 = inlined_call_operand.vmem [shape: f32[256,64], index: 13, kind: input, shape index: {}]   ;;  %s3627_s14 = inlined_call_operand.vmem [shape: f32[1,64], index: 14, kind: input, shape index: {}]   ;;  %s3628_s15 = inlined_call_operand.vmem [shape: f32[64,10], index: 15, kind: input, shape index: {}]   ;;  %s3629_s16 = inlined_call_operand.vmem [shape: f32[1,10], index: 16, kind: input, shape index: {}]   ;;  %s3630_s17 = inlined_call_operand.hbm [shape: f32[2,10], index: 17, kind: output, shape index: {}]  }
   0x1   :  { %3632 = sst [smem:[#allocation5_spill]] %s3613_s0 }
   0x2   :  { %3633 = sst [smem:[#allocation6_spill]] %s3614_s1 }
   0x3   :  { %vm115_vm0 = vcmask 1043456   ;;  %v122_v0 = vld [vmem:[%s3616_s3] sm:$0xf]  ;;  %s3634_s28 = sld [smem:[#allocation5_spill]]  ;;  %v218_v7 = vld [vmem:[%s3618_s5 + $0x18] sm:$0xff] }
   0x4   :  { %2527 = vmatprep.subr.msk.mxu0 %vm115_vm0, %v122_v0  ;;  %s3635_s19 = sld [smem:[#allocation6_spill]]  ;;  %v2342_v4 = vld [vmem:[%s3615_s2] ss:$0 sm:$0xff] }
   0x5   :  { %2528 = vmatpush3.msk.msra.mxu0 %vm115_vm0, %v122_v0 }
   0x9   :  { %v57_v1 = vld [vmem:[%s3634_s28] sm:$0xff]  ;;  %v58_v2 = vld [vmem:[%s3634_s28 + $0x8] sm:$0xff] }
   0xa   :  { %v2341_v3 = vld [vmem:[%s3635_s19] ss:$0 sm:$0xff] }
   0xb   :  { %v66_v5 = vadd.f32 %v2341_v3, %v57_v1  ;;  %v67_v6 = vadd.f32 %v2341_v3, %v58_v2 }
   0xc   :  { %22 = vsyncpa [#allocation3], 0  ;;  %vm80_vm1 = vcmask 1041409   ;;  %2532 = vmatprep.subr.mxu0 %v218_v7  ;;  %vm85_vm2 = vcmask 1043459   ;;  %vm90_vm3 = vcmask 1045509   ;;  %vm95_vm4 = vcmask 1047559  }
   0xd   :  { %v75_v8 = vmul.f32 %v2342_v4, %v66_v5  ;;  %v76_v9 = vmul.f32 %v2342_v4, %v67_v6  ;;  %vm113_vm5 = vcmask 1041408   ;;  %vm117_vm6 = vcmask 1045504   ;;  %v217_v38 = vld [vmem:[%s3618_s5 + $0x10] sm:$0xff]  ;;  %v216_v39 = vld [vmem:[%s3618_s5 + $0x8] sm:$0xff]  ;;  %v215_v40 = vld [vmem:[%s3618_s5] sm:$0xff]  ;;  %s2885_s2 = smov 64  }
   0xe   :  { %vm130_vm7 = vcmask 31744   ;;  %v2883_v41 = vmov 0.0   ;;  %v3028_v42 = vld [vmem:[%s3619_s6 + $0x18] sm:$0xff]  ;;  %v3036_v43 = vld [vmem:[%s3619_s6 + $0x10] sm:$0xff]  ;;  %v3042_v44 = vld [vmem:[%s3619_s6 + $0x8] sm:$0xff]  ;;  %vm2884_vm8 = vmmov 0  }
   0xf   :  { %v79_v10 = vrot.slane %v76_v9, 7  ;;  %v83_v11 = vrot.slane %v75_v8, 7  ;;  %v84_v12 = vrot.slane %v76_v9, 6  ;;  %v88_v13 = vrot.slane %v75_v8, 6  ;;  %2554 = vmatprep.subr.mxu1 %v2883_v41  ;;  %v3049_v45 = vld [vmem:[%s3619_s6] sm:$0xff]  ;;  %2562 = vmatprep.mubr.msk.f32.mxu1 %vm2884_vm8, %v2883_v41  ;;  %s2888_s25 = smov [#allocation2]  }
  0x10   :  { %v89_v14 = vrot.slane %v76_v9, 5  ;;  %v93_v15 = vrot.slane %v75_v8, 5  ;;  %v94_v16 = vrot.slane %v76_v9, 4  ;;  %v98_v17 = vrot.slane %v75_v8, 4  ;;  %2555 = vmatpush3.msra.mxu1 %v3028_v42  ;;  %v2343_v47 = vld [vmem:[%s3617_s4] ss:$0 sm:$0xff] }
  0x11   :  { %v81_v18 = vsel %vm80_vm1, %v79_v10, %v75_v8  ;;  %v86_v19 = vsel %vm85_vm2, %v84_v12, %v83_v11  ;;  %v99_v20 = vrot.slane %v76_v9, 3  ;;  %v102_v21 = vrot.slane %v75_v8, 3  ;;  %2556 = vmatprep.subr.mxu1 %v2883_v41  ;;  %v2347_v51 = vld [vmem:[%s3620_s7] ss:$0 sm:$0xff]  ;;  %s2886_s7 = smov 96   ;;  %s2333_s26 = sshll.u32 %s2888_s25, 4  ;;  %s2334_s26 = int_to_ptr.vmem [resolvable:$true] %s2333_s26 }
  0x12   :  { %v91_v22 = vsel %vm90_vm3, %v89_v14, %v88_v13  ;;  %v96_v23 = vsel %vm95_vm4, %v94_v16, %v93_v15  ;;  %v114_v24 = vsel %vm113_vm5, %v81_v18, %v86_v19  ;;  %v103_v25 = vrot.slane %v76_v9, 2  ;;  %2557 = vmatpush3.msra.mxu1 %v3036_v43  ;;  %v3090_v55 = vld [vmem:[%s3621_s8] ss:$0 sm:$0xff]  ;;  %p2866_p1 = scmp.lt.s32.totalorder %s2334_s26, %s2334_s26 }
  0x13   :  { %v116_v26 = vsel %vm115_vm0, %v114_v24, %v91_v22  ;;  %v100_v27 = vsel %vm80_vm1, %v99_v20, %v98_v17  ;;  %v106_v28 = vrot.slane %v75_v8, 2  ;;  %v107_v29 = vrot.slane %v76_v9, 1  ;;  %2558 = vmatprep.subr.mxu1 %v2883_v41 }
  0x14   :  { %v118_v30 = vsel %vm117_vm6, %v116_v26, %v96_v23  ;;  %v104_v31 = vsel %vm85_vm2, %v103_v25, %v102_v21  ;;  %v110_v32 = vrot.slane %v75_v8, 1  ;;  %2559 = vmatpush3.msra.mxu1 %v3042_v44  ;;  %vm231_vm9 = vcmask 261120  }
  0x15   :  { %2529 = vmatprep.mubr.msk.f32.mxu0 %vm130_vm7, %v118_v30  ;;  %v108_v33 = vsel %vm90_vm3, %v107_v29, %v106_v28  ;;  %v119_v34 = vsel %vm113_vm5, %v100_v27, %v104_v31  ;;  %2560 = vmatprep.subr.mxu1 %v2883_v41  ;;  %vm2120_vm10 = vcmask 523264   ;;  %vm2122_vm11 = vcmask 785408  }
  0x16   :  { %v111_v35 = vsel %vm95_vm4, %v76_v9, %v110_v32  ;;  %v120_v36 = vsel %vm115_vm0, %v119_v34, %v108_v33  ;;  %2561 = vmatpush3.msra.mxu1 %v3049_v45  ;;  %vm2325_vm12 = vcmask 74752  }
  0x17   :  { %v121_v37 = vsel %vm117_vm6, %v120_v36, %v111_v35  ;;  %2576 = vmatprep.subr.mxu1 %v2883_v41 }
  0x18   :  { %2530 = vmatmul.mubr.msk.f32.vlgmr.msra.gmra.mxu0 %vm130_vm7, %v121_v37 }
  0x19   :  { %2533 = vmatpush3.msra.mxu0 %v218_v7 }
  0x1a   :  { %2534 = vmatprep.subr.mxu0 %v217_v38 }
  0x1b   :  { %2535 = vmatpush3.msra.mxu0 %v217_v38 }
  0x1c   :  { %2536 = vmatprep.subr.mxu0 %v216_v39 }
  0x1d   :  { %2537 = vmatpush3.msra.mxu0 %v216_v39 }
  0x1e   :  { %2538 = vmatprep.subr.mxu0 %v215_v40 }
  0x1f   :  { %2539 = vmatpush3.msra.mxu0 %v215_v40 }
  0x20   :  { %2543 = vmatprep.subr.mxu0 %v2883_v41 }
  0xd8   :  { %v2531_v46 = vpop.f32.mrf.mxu0 }
  0xd9   :  { %v212_v50 = vadd.f32 %v2531_v46, %v2343_v47 }
  0xda   :  { %v206_v48 = vpop.f32.mrf.mxu0 }
  0xdb   :  { %v207_v49 = vadd.f32 %v2343_v47, %v206_v48 }
  0xdd   :  { %2540 = vmatprep.mubr.msk.f32.mxu0 %vm231_vm9, %v207_v49 }
  0xde   :  { %2541 = vmatmul.mubr.msk.f32.vlgmr.msra.gmra.mxu0 %vm231_vm9, %v212_v50 }
  0xdf   :  { %2544 = vmatpush3.msra.mxu0 %v3028_v42  ;;  %2551 = vmatprep.mubr.msk.f32.mxu0 %vm2884_vm8, %v2883_v41 }
  0xe0   :  { %2545 = vmatprep.subr.mxu0 %v2883_v41 }
  0xe1   :  { %2546 = vmatpush3.msra.mxu0 %v3036_v43 }
  0xe2   :  { %2547 = vmatprep.subr.mxu0 %v2883_v41 }
  0xe3   :  { %2548 = vmatpush3.msra.mxu0 %v3042_v44 }
  0xe4   :  { %2549 = vmatprep.subr.mxu0 %v2883_v41 }
  0xe5   :  { %2550 = vmatpush3.msra.mxu0 %v3049_v45 }
  0xe6   :  { %2552 = vmatmul.mubr.f32.vlgmr.msra.gmra.mxu0 %v2883_v41  ;;  %2565 = vmatprep.subr.mxu0 %v2883_v41 }
  0xe7   :  { %2566 = vmatpush3.msra.mxu0 %v3028_v42  ;;  %2573 = vmatprep.mubr.msk.f32.mxu0 %vm2884_vm8, %v2883_v41 }
  0xe8   :  { %2567 = vmatprep.subr.mxu0 %v2883_v41 }
  0xe9   :  { %2568 = vmatpush3.msra.mxu0 %v3036_v43 }
  0xea   :  { %2569 = vmatprep.subr.mxu0 %v2883_v41 }
  0xeb   :  { %2570 = vmatpush3.msra.mxu0 %v3042_v44 }
  0xec   :  { %2571 = vmatprep.subr.mxu0 %v2883_v41 }
  0xed   :  { %2572 = vmatpush3.msra.mxu0 %v3049_v45 }
  0xee   :  { %2587 = vmatprep.subr.mxu0 %v2883_v41 }
 0x19e   :  { %v2542_v52 = vpop.f32.mrf.mxu0 }
 0x19f   :  { %v3085_v53 = vadd.f32 %v2542_v52, %v2347_v51 }
 0x1a0   :  { %v304_v54 = vpop.f32.mrf.mxu0 }
 0x1a1   :  { %v3094_v59 = vadd.f32 %v2347_v51, %v304_v54 }
 0x1a6   :  { %v388_v56 = vpop.f32.mrf.mxu0 }
 0x1a7   :  { %v389_v57 = vadd.f32 %v3090_v55, %v388_v56 }
 0x1a8   :  { %v2553_v58 = vpop.f32.mrf.mxu0 }
 0x1a9   :  { %400 = vrot.lane.b32.xlu0 %v389_v57, %s2885_s2  ;;  %v392_v60 = vadd.f32 %v389_v57, %v3094_v59 }
 0x1ab   :  { %v2351_v61 = vmul.f32 -1.442695, %v392_v60 }
 0x1ad   :  { %2765 = vpow2.f32 %v2351_v61 }
 0x1ba   :  { %v2766_v62 = vpop.eup %2765 }
 0x1bb   :  { %v396_v63 = vadd.f32 1.0, %v2766_v62 }
 0x1bd   :  { %2767 = vrcp.f32 %v396_v63 }
 0x1ca   :  { %v2768_v0 = vpop.eup %2767 }
 0x1cb   :  { %v410_v6 = vsub.f32 1.0, %v2768_v0  ;;  %v416_v8 = vmul.f32 0.0, %v2768_v0 }
 0x21b   :  { %v401_v1 = vpop.permute.xlu0 %400 }
 0x21c   :  { %v403_v2 = vmul.f32 %v2768_v0, %v401_v1 }
 0x21e   :  { %405 = vrot.lane.b32.xlu0 %v403_v2, %s2885_s2 }
 0x290   :  { %v406_v3 = vpop.permute.xlu0 %405 }
 0x291   :  { %v408_v4 = vadd.f32 %v406_v3, %v3094_v59 }
 0x293   :  { %2769 = vtanh.f32 %v408_v4 }
 0x2a0   :  { %v2770_v5 = vpop.eup %2769 }
 0x2a1   :  { %412 = vrot.lane.b32.xlu1 %v2770_v5, %s2886_s7 }
 0x313   :  { %v413_v7 = vpop.permute.xlu1 %412 }
 0x314   :  { %v415_v9 = vmul.f32 %v413_v7, %v410_v6 }
 0x316   :  { %v3100_v10 = vadd.f32 %v416_v8, %v415_v9 }
 0x318   :  { %419 = vrot.lane.b32.xlu1 %v3100_v10, %s2886_s7  ;;  %v519_v27 = vrot.slane %v3100_v10, 6 }
 0x38a   :  { %v420_v11 = vpop.permute.xlu1 %419 }
 0x38b   :  { %2563 = vmatmul.mubr.msk.f32.vlgmr.msra.gmra.mxu1 %vm231_vm9, %v420_v11 }
 0x38c   :  { %2577 = vmatpush3.msra.mxu1 %v3028_v42  ;;  %2584 = vmatprep.mubr.msk.f32.mxu1 %vm2884_vm8, %v2883_v41 }
 0x38d   :  { %2578 = vmatprep.subr.mxu1 %v2883_v41 }
 0x38e   :  { %2579 = vmatpush3.msra.mxu1 %v3036_v43 }
 0x38f   :  { %2580 = vmatprep.subr.mxu1 %v2883_v41 }
 0x390   :  { %2581 = vmatpush3.msra.mxu1 %v3042_v44 }
 0x391   :  { %2582 = vmatprep.subr.mxu1 %v2883_v41 }
 0x392   :  { %2583 = vmatpush3.msra.mxu1 %v3049_v45 }
 0x393   :  { %2598 = vmatprep.subr.mxu1 %v2883_v41 }
 0x44b   :  { %v489_v12 = vpop.f32.mrf.mxu1 }
 0x44c   :  { %v490_v13 = vadd.f32 %v3090_v55, %v489_v12 }
 0x44d   :  { %v2564_v14 = vpop.f32.mrf.mxu1 }
 0x44e   :  { %v494_v15 = vrot.slane %v490_v13, 6 }
 0x450   :  { %503 = vrot.lane.b32.xlu0 %v494_v15, %s2885_s2  ;;  %v496_v16 = vadd.f32 %v494_v15, %v3094_v59 }
 0x452   :  { %v2353_v17 = vmul.f32 -1.442695, %v496_v16 }
 0x454   :  { %2771 = vpow2.f32 %v2353_v17 }
 0x461   :  { %v2772_v18 = vpop.eup %2771 }
 0x462   :  { %v500_v19 = vadd.f32 1.0, %v2772_v18 }
 0x464   :  { %2773 = vrcp.f32 %v500_v19 }
 0x471   :  { %v2774_v20 = vpop.eup %2773 }
 0x472   :  { %v513_v26 = vsub.f32 1.0, %v2774_v20  ;;  %v521_v30 = vmul.f32 %v2774_v20, %v519_v27 }
 0x4c2   :  { %v504_v21 = vpop.permute.xlu0 %503 }
 0x4c3   :  { %v506_v22 = vmul.f32 %v2774_v20, %v504_v21 }
 0x4c5   :  { %508 = vrot.lane.b32.xlu1 %v506_v22, %s2885_s2 }
 0x537   :  { %v509_v23 = vpop.permute.xlu1 %508 }
 0x538   :  { %v511_v24 = vadd.f32 %v509_v23, %v3094_v59 }
 0x53a   :  { %2775 = vtanh.f32 %v511_v24 }
 0x547   :  { %v2776_v25 = vpop.eup %2775 }
 0x548   :  { %515 = vrot.lane.b32.xlu0 %v2776_v25, %s2886_s7 }
 0x5ba   :  { %v516_v28 = vpop.permute.xlu0 %515 }
 0x5bb   :  { %v518_v29 = vmul.f32 %v516_v28, %v513_v26 }
 0x5bd   :  { %v522_v31 = vadd.f32 %v521_v30, %v518_v29 }
 0x5bf   :  { %v524_v32 = vrot.slane %v522_v31, 2  ;;  %v625_v56 = vrot.slane %v522_v31, 6  ;;  %v1165_v62 = vsel %vm113_vm5, %v3100_v10, %v522_v31 }
 0x5c1   :  { %525 = vrot.lane.b32.xlu1 %v524_v32, %s2886_s7 }
 0x633   :  { %v526_v33 = vpop.permute.xlu1 %525 }
 0x634   :  { %2574 = vmatmul.mubr.msk.f32.vlgmr.msra.gmra.mxu0 %vm231_vm9, %v526_v33 }
 0x635   :  { %2588 = vmatpush3.msra.mxu0 %v3028_v42  ;;  %2595 = vmatprep.mubr.msk.f32.mxu0 %vm2884_vm8, %v2883_v41 }
 0x636   :  { %2589 = vmatprep.subr.mxu0 %v2883_v41 }
 0x637   :  { %2590 = vmatpush3.msra.mxu0 %v3036_v43 }
 0x638   :  { %2591 = vmatprep.subr.mxu0 %v2883_v41 }
 0x639   :  { %2592 = vmatpush3.msra.mxu0 %v3042_v44 }
 0x63a   :  { %2593 = vmatprep.subr.mxu0 %v2883_v41 }
 0x63b   :  { %2594 = vmatpush3.msra.mxu0 %v3049_v45 }
 0x63c   :  { %2609 = vmatprep.subr.mxu0 %v2883_v41 }
 0x6f4   :  { %v595_v34 = vpop.f32.mrf.mxu0 }
 0x6f5   :  { %v596_v35 = vadd.f32 %v3090_v55, %v595_v34 }
 0x6f6   :  { %v2575_v36 = vpop.f32.mrf.mxu0 }
 0x6f7   :  { %v600_v37 = vrot.slane %v596_v35, 4 }
 0x6f9   :  { %609 = vrot.lane.b32.xlu0 %v600_v37, %s2885_s2  ;;  %v602_v38 = vadd.f32 %v600_v37, %v3094_v59 }
 0x6fb   :  { %v2355_v39 = vmul.f32 -1.442695, %v602_v38 }
 0x6fd   :  { %2777 = vpow2.f32 %v2355_v39 }
 0x70a   :  { %v2778_v40 = vpop.eup %2777 }
 0x70b   :  { %v606_v46 = vadd.f32 1.0, %v2778_v40 }
 0x70d   :  { %2779 = vrcp.f32 %v606_v46 }
 0x71a   :  { %v2780_v47 = vpop.eup %2779 }
 0x71b   :  { %v619_v54 = vsub.f32 1.0, %v2780_v47  ;;  %v627_v58 = vmul.f32 %v2780_v47, %v625_v56 }
 0x76b   :  { %v610_v48 = vpop.permute.xlu0 %609 }
 0x76c   :  { %v612_v49 = vmul.f32 %v2780_v47, %v610_v48 }
 0x76e   :  { %614 = vrot.lane.b32.xlu1 %v612_v49, %s2885_s2 }
 0x7e0   :  { %v615_v50 = vpop.permute.xlu1 %614 }
 0x7e1   :  { %v617_v51 = vadd.f32 %v615_v50, %v3094_v59 }
 0x7e3   :  { %2781 = vtanh.f32 %v617_v51 }
 0x7f0   :  { %v2782_v52 = vpop.eup %2781 }
 0x7f1   :  { %621 = vrot.lane.b32.xlu0 %v2782_v52, %s2886_s7 }
 0x863   :  { %v622_v57 = vpop.permute.xlu0 %621 }
 0x864   :  { %v624_v60 = vmul.f32 %v622_v57, %v619_v54 }
 0x866   :  { %v628_v61 = vadd.f32 %v627_v58, %v624_v60 }
 0x868   :  { %v630_v63 = vrot.slane %v628_v61, 4  ;;  %v1166_v0 = vsel %vm115_vm0, %v1165_v62, %v628_v61  ;;  %v731_v17 = vrot.slane %v628_v61, 6 }
 0x86a   :  { %631 = vrot.lane.b32.xlu1 %v630_v63, %s2886_s7 }
 0x8dc   :  { %v632_v1 = vpop.permute.xlu1 %631 }
 0x8dd   :  { %2585 = vmatmul.mubr.msk.f32.vlgmr.msra.gmra.mxu1 %vm231_vm9, %v632_v1 }
 0x8de   :  { %2599 = vmatpush3.msra.mxu1 %v3028_v42  ;;  %2606 = vmatprep.mubr.msk.f32.mxu1 %vm2884_vm8, %v2883_v41 }
 0x8df   :  { %2600 = vmatprep.subr.mxu1 %v2883_v41 }
 0x8e0   :  { %2601 = vmatpush3.msra.mxu1 %v3036_v43 }
 0x8e1   :  { %2602 = vmatprep.subr.mxu1 %v2883_v41 }
 0x8e2   :  { %2603 = vmatpush3.msra.mxu1 %v3042_v44 }
 0x8e3   :  { %2604 = vmatprep.subr.mxu1 %v2883_v41 }
 0x8e4   :  { %2605 = vmatpush3.msra.mxu1 %v3049_v45 }
 0x8e5   :  { %2620 = vmatprep.subr.mxu1 %v2883_v41 }
 0x99d   :  { %v701_v2 = vpop.f32.mrf.mxu1 }
 0x99e   :  { %v702_v3 = vadd.f32 %v3090_v55, %v701_v2 }
 0x99f   :  { %v2586_v4 = vpop.f32.mrf.mxu1 }
 0x9a0   :  { %v706_v5 = vrot.slane %v702_v3, 2 }
 0x9a2   :  { %715 = vrot.lane.b32.xlu0 %v706_v5, %s2885_s2  ;;  %v708_v6 = vadd.f32 %v706_v5, %v3094_v59 }
 0x9a4   :  { %v2357_v7 = vmul.f32 -1.442695, %v708_v6 }
 0x9a6   :  { %2783 = vpow2.f32 %v2357_v7 }
 0x9b3   :  { %v2784_v8 = vpop.eup %2783 }
 0x9b4   :  { %v712_v9 = vadd.f32 1.0, %v2784_v8 }
 0x9b6   :  { %2785 = vrcp.f32 %v712_v9 }
 0x9c3   :  { %v2786_v10 = vpop.eup %2785 }
 0x9c4   :  { %v725_v16 = vsub.f32 1.0, %v2786_v10  ;;  %v733_v19 = vmul.f32 %v2786_v10, %v731_v17 }
 0xa14   :  { %v716_v11 = vpop.permute.xlu0 %715 }
 0xa15   :  { %v718_v12 = vmul.f32 %v2786_v10, %v716_v11 }
 0xa17   :  { %720 = vrot.lane.b32.xlu1 %v718_v12, %s2885_s2 }
 0xa89   :  { %v721_v13 = vpop.permute.xlu1 %720 }
 0xa8a   :  { %v723_v14 = vadd.f32 %v721_v13, %v3094_v59 }
 0xa8c   :  { %2787 = vtanh.f32 %v723_v14 }
 0xa99   :  { %v2788_v15 = vpop.eup %2787 }
 0xa9a   :  { %727 = vrot.lane.b32.xlu0 %v2788_v15, %s2886_s7 }
 0xb0c   :  { %v728_v18 = vpop.permute.xlu0 %727 }
 0xb0d   :  { %v730_v20 = vmul.f32 %v728_v18, %v725_v16 }
 0xb0f   :  { %v734_v21 = vadd.f32 %v733_v19, %v730_v20 }
 0xb11   :  { %v736_v22 = vrot.slane %v734_v21, 6  ;;  %v3162_v23 = vsel %vm117_vm6, %v1166_v0, %v734_v21 }
 0xb13   :  { %737 = vrot.lane.b32.xlu1 %v736_v22, %s2886_s7 }
 0xb85   :  { %v738_v24 = vpop.permute.xlu1 %737 }
 0xb86   :  { %2596 = vmatmul.mubr.msk.f32.vlgmr.msra.gmra.mxu0 %vm231_vm9, %v738_v24 }
 0xb87   :  { %2610 = vmatpush3.msra.mxu0 %v3028_v42  ;;  %2617 = vmatprep.mubr.msk.f32.mxu0 %vm2884_vm8, %v2883_v41 }
 0xb88   :  { %2611 = vmatprep.subr.mxu0 %v2883_v41 }
 0xb89   :  { %2612 = vmatpush3.msra.mxu0 %v3036_v43 }
 0xb8a   :  { %2613 = vmatprep.subr.mxu0 %v2883_v41 }
 0xb8b   :  { %2614 = vmatpush3.msra.mxu0 %v3042_v44 }
 0xb8c   :  { %2615 = vmatprep.subr.mxu0 %v2883_v41 }
 0xb8d   :  { %2616 = vmatpush3.msra.mxu0 %v3049_v45 }
 0xc46   :  { %v807_v59 = vpop.f32.mrf.mxu0 }
 0xc47   :  { %v808_v25 = vadd.f32 %v3090_v55, %v807_v59 }
 0xc48   :  { %v2597_v26 = vpop.f32.mrf.mxu0 }
 0xc49   :  { %819 = vrot.lane.b32.xlu0 %v808_v25, %s2885_s2  ;;  %v811_v27 = vadd.f32 %v808_v25, %v3085_v53 }
 0xc4b   :  { %v2359_v28 = vmul.f32 -1.442695, %v811_v27 }
 0xc4d   :  { %2789 = vpow2.f32 %v2359_v28 }
 0xc5a   :  { %v2790_v29 = vpop.eup %2789 }
 0xc5b   :  { %v815_v30 = vadd.f32 1.0, %v2790_v29 }
 0xc5d   :  { %2791 = vrcp.f32 %v815_v30 }
 0xc6a   :  { %v2792_v31 = vpop.eup %2791 }
 0xc6b   :  { %v829_v37 = vsub.f32 1.0, %v2792_v31  ;;  %v836_v39 = vmul.f32 %v2792_v31, %v736_v22 }
 0xcbb   :  { %v820_v32 = vpop.permute.xlu0 %819 }
 0xcbc   :  { %v822_v33 = vmul.f32 %v2792_v31, %v820_v32 }
 0xcbe   :  { %824 = vrot.lane.b32.xlu1 %v822_v33, %s2885_s2 }
 0xd30   :  { %v825_v34 = vpop.permute.xlu1 %824 }
 0xd31   :  { %v827_v35 = vadd.f32 %v825_v34, %v3085_v53 }
 0xd33   :  { %2793 = vtanh.f32 %v827_v35 }
 0xd40   :  { %v2794_v36 = vpop.eup %2793 }
 0xd41   :  { %831 = vrot.lane.b32.xlu0 %v2794_v36, %s2886_s7 }
 0xdb3   :  { %v832_v38 = vpop.permute.xlu0 %831 }
 0xdb4   :  { %v834_v40 = vmul.f32 %v832_v38, %v829_v37 }
 0xdb6   :  { %v3181_v46 = vadd.f32 %v836_v39, %v834_v40 }
 0xdb8   :  { %839 = vrot.lane.b32.xlu1 %v3181_v46, %s2886_s7  ;;  %v939_v62 = vrot.slane %v3181_v46, 6 }
 0xe2a   :  { %v840_v47 = vpop.permute.xlu1 %839 }
 0xe2b   :  { %2607 = vmatmul.mubr.msk.f32.vlgmr.msra.gmra.mxu1 %vm231_vm9, %v840_v47  ;;  %v3235_v47 = vld [vmem:[%s3623_s10 + $0x18] sm:$0xff] }
 0xe2c   :  { %2621 = vmatpush3.msra.mxu1 %v3028_v42  ;;  %2628 = vmatprep.mubr.msk.f32.mxu1 %vm2884_vm8, %v2883_v41 }
 0xe2d   :  { %2622 = vmatprep.subr.mxu1 %v2883_v41 }
 0xe2e   :  { %2623 = vmatpush3.msra.mxu1 %v3036_v43 }
 0xe2f   :  { %2624 = vmatprep.subr.mxu1 %v2883_v41 }
 0xe30   :  { %2625 = vmatpush3.msra.mxu1 %v3042_v44 }
 0xe31   :  { %2626 = vmatprep.subr.mxu1 %v2883_v41 }
 0xe32   :  { %2627 = vmatpush3.msra.mxu1 %v3049_v45 }
 0xe33   :  { %2642 = vmatprep.subr.mxu1 %v2883_v41 }
 0xeeb   :  { %v909_v48 = vpop.f32.mrf.mxu1 }
 0xeec   :  { %v910_v42 = vadd.f32 %v3090_v55, %v909_v48  ;;  %v3240_v48 = vld [vmem:[%s3623_s10 + $0x10] sm:$0xff] }
 0xeed   :  { %v2608_v49 = vpop.f32.mrf.mxu1 }
 0xeee   :  { %v914_v50 = vrot.slane %v910_v42, 6  ;;  %v3253_v42 = vld [vmem:[%s3623_s10 + $0x8] sm:$0xff] }
 0xeef   :  { %v1156_v49 = vld [vmem:[%s3622_s9 + $0x8] sm:$0xff] }
 0xef0   :  { %923 = vrot.lane.b32.xlu0 %v914_v50, %s2885_s2  ;;  %v916_v51 = vadd.f32 %v914_v50, %v3085_v53  ;;  %v3263_v50 = vld [vmem:[%s3623_s10] sm:$0xff] }
 0xef2   :  { %v2361_v43 = vmul.f32 -1.442695, %v916_v51  ;;  %v1155_v51 = vld [vmem:[%s3622_s9] sm:$0xff] }
 0xef4   :  { %2795 = vpow2.f32 %v2361_v43 }
 0xf01   :  { %v2796_v52 = vpop.eup %2795 }
 0xf02   :  { %v920_v54 = vadd.f32 1.0, %v2796_v52 }
 0xf04   :  { %2797 = vrcp.f32 %v920_v54 }
 0xf11   :  { %v2798_v44 = vpop.eup %2797 }
 0xf12   :  { %v933_v61 = vsub.f32 1.0, %v2798_v44  ;;  %v941_v1 = vmul.f32 %v2798_v44, %v939_v62 }
 0xf62   :  { %v924_v56 = vpop.permute.xlu0 %923 }
 0xf63   :  { %v926_v57 = vmul.f32 %v2798_v44, %v924_v56 }
 0xf65   :  { %928 = vrot.lane.b32.xlu1 %v926_v57, %s2885_s2 }
 0xfd7   :  { %v929_v45 = vpop.permute.xlu1 %928 }
 0xfd8   :  { %v931_v58 = vadd.f32 %v929_v45, %v3085_v53 }
 0xfda   :  { %2799 = vtanh.f32 %v931_v58 }
 0xfe7   :  { %v2800_v60 = vpop.eup %2799 }
 0xfe8   :  { %935 = vrot.lane.b32.xlu0 %v2800_v60, %s2886_s7  ;;  %v3292_v60 = vld [vmem:[%s3625_s12] ss:$0 sm:$0xff] }
0x105a   :  { %v936_v63 = vpop.permute.xlu0 %935 }
0x105b   :  { %v938_v0 = vmul.f32 %v936_v63, %v933_v61 }
0x105d   :  { %v942_v2 = vadd.f32 %v941_v1, %v938_v0  ;;  %v2366_v1 = vld [vmem:[%s3624_s11] ss:$0 sm:$0xff]  ;;  %s2887_s11 = smov 32  }
0x105f   :  { %v944_v3 = vrot.slane %v942_v2, 2  ;;  %v1045_v20 = vrot.slane %v942_v2, 6  ;;  %v1168_v25 = vsel %vm113_vm5, %v3181_v46, %v942_v2 }
0x1061   :  { %945 = vrot.lane.b32.xlu1 %v944_v3, %s2886_s7 }
0x10d3   :  { %v946_v4 = vpop.permute.xlu1 %945 }
0x10d4   :  { %2618 = vmatmul.mubr.msk.f32.vlgmr.msra.gmra.mxu0 %vm231_vm9, %v946_v4 }
0x1194   :  { %v1015_v5 = vpop.f32.mrf.mxu0 }
0x1195   :  { %v1016_v6 = vadd.f32 %v3090_v55, %v1015_v5 }
0x1196   :  { %v2619_v7 = vpop.f32.mrf.mxu0 }
0x1197   :  { %v1020_v8 = vrot.slane %v1016_v6, 4 }
0x1199   :  { %1029 = vrot.lane.b32.xlu0 %v1020_v8, %s2885_s2  ;;  %v1022_v9 = vadd.f32 %v1020_v8, %v3085_v53 }
0x119b   :  { %v2363_v10 = vmul.f32 -1.442695, %v1022_v9 }
0x119d   :  { %2801 = vpow2.f32 %v2363_v10 }
0x11aa   :  { %v2802_v11 = vpop.eup %2801 }
0x11ab   :  { %v1026_v12 = vadd.f32 1.0, %v2802_v11 }
0x11ad   :  { %2803 = vrcp.f32 %v1026_v12 }
0x11ba   :  { %v2804_v13 = vpop.eup %2803 }
0x11bb   :  { %v1039_v19 = vsub.f32 1.0, %v2804_v13  ;;  %v1047_v22 = vmul.f32 %v2804_v13, %v1045_v20 }
0x120b   :  { %v1030_v14 = vpop.permute.xlu0 %1029 }
0x120c   :  { %v1032_v15 = vmul.f32 %v2804_v13, %v1030_v14 }
0x120e   :  { %1034 = vrot.lane.b32.xlu1 %v1032_v15, %s2885_s2 }
0x1280   :  { %v1035_v16 = vpop.permute.xlu1 %1034 }
0x1281   :  { %v1037_v17 = vadd.f32 %v1035_v16, %v3085_v53 }
0x1283   :  { %2805 = vtanh.f32 %v1037_v17 }
0x1290   :  { %v2806_v18 = vpop.eup %2805 }
0x1291   :  { %1041 = vrot.lane.b32.xlu0 %v2806_v18, %s2886_s7 }
0x1303   :  { %v1042_v21 = vpop.permute.xlu0 %1041 }
0x1304   :  { %v1044_v24 = vmul.f32 %v1042_v21, %v1039_v19 }
0x1306   :  { %v3211_v59 = vadd.f32 %v1047_v22, %v1044_v24 }
0x1308   :  { %v1050_v26 = vrot.slane %v3211_v59, 4  ;;  %v3218_v27 = vsel %vm115_vm0, %v1168_v25, %v3211_v59  ;;  %v1151_v54 = vrot.slane %v3211_v59, 6 }
0x130a   :  { %1051 = vrot.lane.b32.xlu1 %v1050_v26, %s2886_s7 }
0x137c   :  { %v1052_v28 = vpop.permute.xlu1 %1051 }
0x137d   :  { %2629 = vmatmul.mubr.msk.f32.vlgmr.msra.gmra.mxu1 %vm231_vm9, %v1052_v28 }
0x137e   :  { %2650 = vmatprep.mubr.msk.f32.mxu1 %vm2884_vm8, %v2883_v41  ;;  %2643 = vmatpush3.msra.mxu1 %v3235_v47 }
0x137f   :  { %2644 = vmatprep.subr.mxu1 %v2883_v41 }
0x1380   :  { %2645 = vmatpush3.msra.mxu1 %v3240_v48 }
0x1381   :  { %2646 = vmatprep.subr.mxu1 %v2883_v41 }
0x1382   :  { %2647 = vmatpush3.msra.mxu1 %v3253_v42 }
0x1383   :  { %2648 = vmatprep.subr.mxu1 %v2883_v41 }
0x1384   :  { %2649 = vmatpush3.msra.mxu1 %v3263_v50 }
0x1385   :  { %2651 = vmatmul.mubr.f32.vlgmr.msra.gmra.mxu1 %v2883_v41  ;;  %2664 = vmatprep.subr.mxu1 %v2883_v41 }
0x1386   :  { %2665 = vmatpush3.msra.mxu1 %v3235_v47  ;;  %2672 = vmatprep.mubr.msk.f32.mxu1 %vm2884_vm8, %v2883_v41 }
0x1387   :  { %2666 = vmatprep.subr.mxu1 %v2883_v41 }
0x1388   :  { %2667 = vmatpush3.msra.mxu1 %v3240_v48 }
0x1389   :  { %2668 = vmatprep.subr.mxu1 %v2883_v41 }
0x138a   :  { %2669 = vmatpush3.msra.mxu1 %v3253_v42 }
0x138b   :  { %2670 = vmatprep.subr.mxu1 %v2883_v41 }
0x138c   :  { %2671 = vmatpush3.msra.mxu1 %v3263_v50 }
0x138d   :  { %2686 = vmatprep.subr.mxu1 %v2883_v41 }
0x143d   :  { %v1121_v29 = vpop.f32.mrf.mxu1 }
0x143e   :  { %v1122_v30 = vadd.f32 %v3090_v55, %v1121_v29 }
0x143f   :  { %v2630_v31 = vpop.f32.mrf.mxu1 }
0x1440   :  { %v1126_v32 = vrot.slane %v1122_v30, 2 }
0x1442   :  { %1135 = vrot.lane.b32.xlu0 %v1126_v32, %s2885_s2  ;;  %v1128_v33 = vadd.f32 %v1126_v32, %v3085_v53 }
0x1444   :  { %v2365_v34 = vmul.f32 -1.442695, %v1128_v33 }
0x1445   :  { %v1334_v61 = vpop.f32.mrf.mxu1 }
0x1446   :  { %2807 = vpow2.f32 %v2365_v34  ;;  %v1335_v62 = vadd.f32 %v3292_v60, %v1334_v61 }
0x1447   :  { %v2652_v63 = vpop.f32.mrf.mxu1 }
0x1453   :  { %v2808_v35 = vpop.eup %2807 }
0x1454   :  { %v1132_v36 = vadd.f32 1.0, %v2808_v35 }
0x1456   :  { %2809 = vrcp.f32 %v1132_v36 }
0x1463   :  { %v2810_v37 = vpop.eup %2809 }
0x1464   :  { %v1145_v52 = vsub.f32 1.0, %v2810_v37  ;;  %v1153_v56 = vmul.f32 %v2810_v37, %v1151_v54 }
0x14b4   :  { %v1136_v38 = vpop.permute.xlu0 %1135 }
0x14b5   :  { %v1138_v39 = vmul.f32 %v2810_v37, %v1136_v38 }
0x14b7   :  { %1140 = vrot.lane.b32.xlu1 %v1138_v39, %s2885_s2 }
0x14bb   :  { %1179 = vrot.lane.b32.xlu1 %v3162_v23, %s2886_s7  ;;  %v1157_v23 = vld [vmem:[%s3622_s9 + $0x10] sm:$0xff] }
0x14bf   :  { %1346 = vrot.lane.b32.xlu1 %v1335_v62, %s2885_s2 }
0x1529   :  { %v1141_v55 = vpop.permute.xlu1 %1140 }
0x152a   :  { %v1143_v40 = vadd.f32 %v1141_v55, %v3085_v53  ;;  %v1158_v53 = vld [vmem:[%s3622_s9 + $0x18] sm:$0xff] }
0x152b   :  { %2631 = vmatprep.subr.mxu0 %v1158_v53 }
0x152c   :  { %2811 = vtanh.f32 %v1143_v40  ;;  %2632 = vmatpush3.msra.mxu0 %v1158_v53 }
0x152d   :  { %v1180_v46 = vpop.permute.xlu1 %1179  ;;  %2633 = vmatprep.subr.mxu0 %v1157_v23 }
0x152e   :  { %2639 = vmatprep.mubr.msk.f32.mxu0 %vm231_vm9, %v1180_v46  ;;  %2634 = vmatpush3.msra.mxu0 %v1157_v23 }
0x152f   :  { %2635 = vmatprep.subr.mxu0 %v1156_v49 }
0x1530   :  { %2636 = vmatpush3.msra.mxu0 %v1156_v49 }
0x1531   :  { %2637 = vmatprep.subr.mxu0 %v1155_v51  ;;  %v1347_v10 = vpop.permute.xlu1 %1346 }
0x1532   :  { %2638 = vmatpush3.msra.mxu0 %v1155_v51 }
0x1533   :  { %2653 = vmatprep.subr.mxu0 %v2883_v41 }
0x1539   :  { %v2812_v43 = vpop.eup %2811 }
0x153a   :  { %1147 = vrot.lane.b32.xlu0 %v2812_v43, %s2886_s7 }
0x15ac   :  { %v1148_v44 = vpop.permute.xlu0 %1147 }
0x15ad   :  { %v1150_v57 = vmul.f32 %v1148_v44, %v1145_v52 }
0x15af   :  { %v1154_v45 = vadd.f32 %v1153_v56, %v1150_v57 }
0x15b1   :  { %v1170_v58 = vsel %vm117_vm6, %v3218_v27, %v1154_v45 }
0x15b2   :  { %1181 = vrot.lane.b32.xlu0 %v1170_v58, %s2886_s7 }
0x1624   :  { %v1182_v0 = vpop.permute.xlu0 %1181 }
0x1625   :  { %2640 = vmatmul.mubr.msk.f32.vlgmr.msra.gmra.mxu0 %vm231_vm9, %v1182_v0 }
0x1626   :  { %2654 = vmatpush3.msra.mxu0 %v3235_v47  ;;  %2661 = vmatprep.mubr.msk.f32.mxu0 %vm2884_vm8, %v2883_v41 }
0x1627   :  { %2655 = vmatprep.subr.mxu0 %v2883_v41 }
0x1628   :  { %2656 = vmatpush3.msra.mxu0 %v3240_v48 }
0x1629   :  { %2657 = vmatprep.subr.mxu0 %v2883_v41 }
0x162a   :  { %2658 = vmatpush3.msra.mxu0 %v3253_v42 }
0x162b   :  { %2659 = vmatprep.subr.mxu0 %v2883_v41 }
0x162c   :  { %2660 = vmatpush3.msra.mxu0 %v3263_v50 }
0x162d   :  { %2675 = vmatprep.subr.mxu0 %v2883_v41 }
0x16e5   :  { %v2641_v2 = vpop.f32.mrf.mxu0 }
0x16e6   :  { %v3310_v3 = vadd.f32 %v2641_v2, %v2366_v1 }
0x16e7   :  { %v1253_v4 = vpop.f32.mrf.mxu0 }
0x16e8   :  { %v3312_v5 = vadd.f32 %v2366_v1, %v1253_v4 }
0x16ea   :  { %v1338_v6 = vadd.f32 %v1335_v62, %v3312_v5 }
0x16ec   :  { %v2370_v7 = vmul.f32 -1.442695, %v1338_v6 }
0x16ee   :  { %2813 = vpow2.f32 %v2370_v7 }
0x16fb   :  { %v2814_v8 = vpop.eup %2813 }
0x16fc   :  { %v1342_v9 = vadd.f32 1.0, %v2814_v8 }
0x16fe   :  { %2815 = vrcp.f32 %v1342_v9 }
0x170b   :  { %v2816_v11 = vpop.eup %2815 }
0x170c   :  { %v1349_v12 = vmul.f32 %v2816_v11, %v1347_v10  ;;  %v1356_v16 = vsub.f32 1.0, %v2816_v11  ;;  %v1362_v18 = vmul.f32 0.0, %v2816_v11 }
0x170e   :  { %1351 = vrot.lane.b32.xlu0 %v1349_v12, %s2885_s2 }
0x1780   :  { %v1352_v13 = vpop.permute.xlu0 %1351 }
0x1781   :  { %v1354_v14 = vadd.f32 %v1352_v13, %v3312_v5 }
0x1783   :  { %2817 = vtanh.f32 %v1354_v14 }
0x1790   :  { %v2818_v15 = vpop.eup %2817 }
0x1791   :  { %1358 = vrot.lane.b32.xlu1 %v2818_v15, %s2886_s7 }
0x1803   :  { %v1359_v17 = vpop.permute.xlu1 %1358 }
0x1804   :  { %v1361_v19 = vmul.f32 %v1359_v17, %v1356_v16 }
0x1806   :  { %v1363_v20 = vadd.f32 %v1362_v18, %v1361_v19 }
0x1808   :  { %1365 = vrot.lane.b32.xlu0 %v1363_v20, %s2886_s7  ;;  %v1465_v36 = vrot.slane %v1363_v20, 6 }
0x187a   :  { %v3319_v21 = vpop.permute.xlu0 %1365 }
0x187b   :  { %2662 = vmatmul.mubr.msk.f32.vlgmr.msra.gmra.mxu0 %vm231_vm9, %v3319_v21 }
0x187c   :  { %2676 = vmatpush3.msra.mxu0 %v3235_v47  ;;  %2683 = vmatprep.mubr.msk.f32.mxu0 %vm2884_vm8, %v2883_v41 }
0x187d   :  { %2677 = vmatprep.subr.mxu0 %v2883_v41 }
0x187e   :  { %2678 = vmatpush3.msra.mxu0 %v3240_v48 }
0x187f   :  { %2679 = vmatprep.subr.mxu0 %v2883_v41 }
0x1880   :  { %2680 = vmatpush3.msra.mxu0 %v3253_v42 }
0x1881   :  { %2681 = vmatprep.subr.mxu0 %v2883_v41 }
0x1882   :  { %2682 = vmatpush3.msra.mxu0 %v3263_v50 }
0x1883   :  { %2697 = vmatprep.subr.mxu0 %v2883_v41 }
0x193b   :  { %v1435_v22 = vpop.f32.mrf.mxu0 }
0x193c   :  { %v1436_v24 = vadd.f32 %v3292_v60, %v1435_v22 }
0x193d   :  { %v2663_v59 = vpop.f32.mrf.mxu0 }
0x193e   :  { %v1440_v25 = vrot.slane %v1436_v24, 6 }
0x1940   :  { %1449 = vrot.lane.b32.xlu1 %v1440_v25, %s2885_s2  ;;  %v1442_v26 = vadd.f32 %v1440_v25, %v3312_v5 }
0x1942   :  { %v2372_v27 = vmul.f32 -1.442695, %v1442_v26 }
0x1944   :  { %2819 = vpow2.f32 %v2372_v27 }
0x1951   :  { %v2820_v28 = vpop.eup %2819 }
0x1952   :  { %v1446_v29 = vadd.f32 1.0, %v2820_v28 }
0x1954   :  { %2821 = vrcp.f32 %v1446_v29 }
0x1961   :  { %v2822_v30 = vpop.eup %2821 }
0x1962   :  { %v1459_v37 = vsub.f32 1.0, %v2822_v30  ;;  %v1467_v55 = vmul.f32 %v2822_v30, %v1465_v36 }
0x19b2   :  { %v1450_v31 = vpop.permute.xlu1 %1449 }
0x19b3   :  { %v1452_v32 = vmul.f32 %v2822_v30, %v1450_v31 }
0x19b5   :  { %1454 = vrot.lane.b32.xlu0 %v1452_v32, %s2885_s2 }
0x1a27   :  { %v1455_v33 = vpop.permute.xlu0 %1454 }
0x1a28   :  { %v1457_v34 = vadd.f32 %v1455_v33, %v3312_v5 }
0x1a2a   :  { %2823 = vtanh.f32 %v1457_v34 }
0x1a37   :  { %v2824_v35 = vpop.eup %2823 }
0x1a38   :  { %1461 = vrot.lane.b32.xlu1 %v2824_v35, %s2886_s7 }
0x1aaa   :  { %v1462_v38 = vpop.permute.xlu1 %1461 }
0x1aab   :  { %v1464_v39 = vmul.f32 %v1462_v38, %v1459_v37 }
0x1aad   :  { %v3339_v40 = vadd.f32 %v1467_v55, %v1464_v39 }
0x1aaf   :  { %v1470_v46 = vrot.slane %v3339_v40, 2  ;;  %v1571_v0 = vrot.slane %v3339_v40, 6  ;;  %v2241_v40 = vld [vmem:[%s3628_s15 + $0x20] sm:$0xff] }
0x1ab1   :  { %1471 = vrot.lane.b32.xlu0 %v1470_v46, %s2886_s7 }
0x1b23   :  { %v1472_v53 = vpop.permute.xlu0 %1471 }
0x1b24   :  { %2673 = vmatmul.mubr.msk.f32.vlgmr.msra.gmra.mxu1 %vm231_vm9, %v1472_v53 }
0x1b25   :  { %2687 = vmatpush3.msra.mxu1 %v3235_v47  ;;  %2694 = vmatprep.mubr.msk.f32.mxu1 %vm2884_vm8, %v2883_v41 }
0x1b26   :  { %2688 = vmatprep.subr.mxu1 %v2883_v41 }
0x1b27   :  { %2689 = vmatpush3.msra.mxu1 %v3240_v48 }
0x1b28   :  { %2690 = vmatprep.subr.mxu1 %v2883_v41 }
0x1b29   :  { %2691 = vmatpush3.msra.mxu1 %v3253_v42 }
0x1b2a   :  { %2692 = vmatprep.subr.mxu1 %v2883_v41 }
0x1b2b   :  { %2693 = vmatpush3.msra.mxu1 %v3263_v50 }
0x1b2c   :  { %2708 = vmatprep.subr.mxu1 %v2883_v41 }
0x1be4   :  { %v1541_v23 = vpop.f32.mrf.mxu1 }
0x1be5   :  { %v1542_v49 = vadd.f32 %v3292_v60, %v1541_v23 }
0x1be6   :  { %v2674_v51 = vpop.f32.mrf.mxu1 }
0x1be7   :  { %v1546_v43 = vrot.slane %v1542_v49, 4 }
0x1be9   :  { %1555 = vrot.lane.b32.xlu1 %v1546_v43, %s2885_s2  ;;  %v1548_v52 = vadd.f32 %v1546_v43, %v3312_v5 }
0x1beb   :  { %v2374_v54 = vmul.f32 -1.442695, %v1548_v52 }
0x1bed   :  { %2825 = vpow2.f32 %v2374_v54 }
0x1bfa   :  { %v2826_v44 = vpop.eup %2825 }
0x1bfb   :  { %v1552_v56 = vadd.f32 1.0, %v2826_v44 }
0x1bfd   :  { %2827 = vrcp.f32 %v1552_v56 }
0x1c0a   :  { %v2828_v57 = vpop.eup %2827 }
0x1c0b   :  { %v1565_v1 = vsub.f32 1.0, %v2828_v57  ;;  %v1573_v4 = vmul.f32 %v2828_v57, %v1571_v0 }
0x1c5b   :  { %v1556_v45 = vpop.permute.xlu1 %1555 }
0x1c5c   :  { %v1558_v58 = vmul.f32 %v2828_v57, %v1556_v45 }
0x1c5e   :  { %1560 = vrot.lane.b32.xlu0 %v1558_v58, %s2885_s2 }
0x1cd0   :  { %v1561_v61 = vpop.permute.xlu0 %1560 }
0x1cd1   :  { %v1563_v62 = vadd.f32 %v1561_v61, %v3312_v5 }
0x1cd3   :  { %2829 = vtanh.f32 %v1563_v62 }
0x1ce0   :  { %v2830_v63 = vpop.eup %2829 }
0x1ce1   :  { %1567 = vrot.lane.b32.xlu1 %v2830_v63, %s2886_s7 }
0x1d53   :  { %v1568_v2 = vpop.permute.xlu1 %1567 }
0x1d54   :  { %v1570_v6 = vmul.f32 %v1568_v2, %v1565_v1 }
0x1d56   :  { %v3363_v7 = vadd.f32 %v1573_v4, %v1570_v6 }
0x1d58   :  { %v1576_v8 = vrot.slane %v3363_v7, 4  ;;  %v1677_v25 = vrot.slane %v3363_v7, 6  ;;  %v2141_v7 = vld [vmem:[%s3626_s13 + $0x70] sm:$0xff] }
0x1d5a   :  { %1577 = vrot.lane.b32.xlu0 %v1576_v8, %s2886_s7 }
0x1dcc   :  { %v1578_v9 = vpop.permute.xlu0 %1577 }
0x1dcd   :  { %2684 = vmatmul.mubr.msk.f32.vlgmr.msra.gmra.mxu0 %vm231_vm9, %v1578_v9 }
0x1dce   :  { %2698 = vmatpush3.msra.mxu0 %v3235_v47  ;;  %2705 = vmatprep.mubr.msk.f32.mxu0 %vm2884_vm8, %v2883_v41 }
0x1dcf   :  { %2699 = vmatprep.subr.mxu0 %v2883_v41 }
0x1dd0   :  { %2700 = vmatpush3.msra.mxu0 %v3240_v48 }
0x1dd1   :  { %2701 = vmatprep.subr.mxu0 %v2883_v41 }
0x1dd2   :  { %2702 = vmatpush3.msra.mxu0 %v3253_v42 }
0x1dd3   :  { %2703 = vmatprep.subr.mxu0 %v2883_v41 }
0x1dd4   :  { %2704 = vmatpush3.msra.mxu0 %v3263_v50 }
0x1dd5   :  { %2719 = vmatprep.subr.mxu0 %v2883_v41 }
0x1e8d   :  { %v1647_v10 = vpop.f32.mrf.mxu0 }
0x1e8e   :  { %v1648_v11 = vadd.f32 %v3292_v60, %v1647_v10 }
0x1e8f   :  { %v2685_v12 = vpop.f32.mrf.mxu0 }
0x1e90   :  { %v1652_v13 = vrot.slane %v1648_v11, 2 }
0x1e92   :  { %1661 = vrot.lane.b32.xlu1 %v1652_v13, %s2885_s2  ;;  %v1654_v14 = vadd.f32 %v1652_v13, %v3312_v5 }
0x1e94   :  { %v2376_v15 = vmul.f32 -1.442695, %v1654_v14 }
0x1e96   :  { %2831 = vpow2.f32 %v2376_v15 }
0x1ea3   :  { %v2832_v16 = vpop.eup %2831 }
0x1ea4   :  { %v1658_v17 = vadd.f32 1.0, %v2832_v16 }
0x1ea6   :  { %2833 = vrcp.f32 %v1658_v17 }
0x1eb3   :  { %v2834_v18 = vpop.eup %2833 }
0x1eb4   :  { %v1671_v26 = vsub.f32 1.0, %v2834_v18  ;;  %v1679_v28 = vmul.f32 %v2834_v18, %v1677_v25 }
0x1f04   :  { %v1662_v19 = vpop.permute.xlu1 %1661 }
0x1f05   :  { %v1664_v20 = vmul.f32 %v2834_v18, %v1662_v19 }
0x1f07   :  { %1666 = vrot.lane.b32.xlu0 %v1664_v20, %s2885_s2 }
0x1f79   :  { %v1667_v22 = vpop.permute.xlu0 %1666 }
0x1f7a   :  { %v1669_v24 = vadd.f32 %v1667_v22, %v3312_v5 }
0x1f7c   :  { %2835 = vtanh.f32 %v1669_v24 }
0x1f89   :  { %v2836_v59 = vpop.eup %2835 }
0x1f8a   :  { %1673 = vrot.lane.b32.xlu1 %v2836_v59, %s2886_s7 }
0x1ffc   :  { %v1674_v27 = vpop.permute.xlu1 %1673 }
0x1ffd   :  { %v1676_v29 = vmul.f32 %v1674_v27, %v1671_v26 }
0x1fff   :  { %v1680_v30 = vadd.f32 %v1679_v28, %v1676_v29 }
0x2001   :  { %v3387_v31 = vrot.slane %v1680_v30, 6 }
0x2003   :  { %1683 = vrot.lane.b32.xlu0 %v3387_v31, %s2886_s7 }
0x2075   :  { %v1684_v32 = vpop.permute.xlu0 %1683 }
0x2076   :  { %2695 = vmatmul.mubr.msk.f32.vlgmr.msra.gmra.mxu1 %vm231_vm9, %v1684_v32 }
0x2077   :  { %2709 = vmatpush3.msra.mxu1 %v3235_v47  ;;  %2716 = vmatprep.mubr.msk.f32.mxu1 %vm2884_vm8, %v2883_v41 }
0x2078   :  { %2710 = vmatprep.subr.mxu1 %v2883_v41 }
0x2079   :  { %2711 = vmatpush3.msra.mxu1 %v3240_v48 }
0x207a   :  { %2712 = vmatprep.subr.mxu1 %v2883_v41 }
0x207b   :  { %2713 = vmatpush3.msra.mxu1 %v3253_v42 }
0x207c   :  { %2714 = vmatprep.subr.mxu1 %v2883_v41 }
0x207d   :  { %2715 = vmatpush3.msra.mxu1 %v3263_v50 }
0x2136   :  { %v1753_v5 = vpop.f32.mrf.mxu1 }
0x2137   :  { %v1754_v33 = vadd.f32 %v3292_v60, %v1753_v5 }
0x2138   :  { %v2696_v34 = vpop.f32.mrf.mxu1 }
0x2139   :  { %1765 = vrot.lane.b32.xlu1 %v1754_v33, %s2885_s2  ;;  %v1757_v35 = vadd.f32 %v1754_v33, %v3310_v3 }
0x213b   :  { %v2378_v36 = vmul.f32 -1.442695, %v1757_v35 }
0x213d   :  { %2837 = vpow2.f32 %v2378_v36 }
0x214a   :  { %v2838_v37 = vpop.eup %2837 }
0x214b   :  { %v1761_v38 = vadd.f32 1.0, %v2838_v37 }
0x214d   :  { %2839 = vrcp.f32 %v1761_v38 }
0x215a   :  { %v2840_v39 = vpop.eup %2839 }
0x215b   :  { %v1775_v43 = vsub.f32 1.0, %v2840_v39  ;;  %v1782_v54 = vmul.f32 %v2840_v39, %v3387_v31 }
0x21ab   :  { %v1766_v55 = vpop.permute.xlu1 %1765 }
0x21ac   :  { %v1768_v53 = vmul.f32 %v2840_v39, %v1766_v55 }
0x21ae   :  { %1770 = vrot.lane.b32.xlu0 %v1768_v53, %s2885_s2 }
0x2220   :  { %v1771_v23 = vpop.permute.xlu0 %1770 }
0x2221   :  { %v1773_v49 = vadd.f32 %v1771_v23, %v3310_v3 }
0x2223   :  { %2841 = vtanh.f32 %v1773_v49 }
0x2230   :  { %v2842_v51 = vpop.eup %2841 }
0x2231   :  { %1777 = vrot.lane.b32.xlu1 %v2842_v51, %s2886_s7 }
0x22a3   :  { %v1778_v52 = vpop.permute.xlu1 %1777 }
0x22a4   :  { %v1780_v44 = vmul.f32 %v1778_v52, %v1775_v43 }
0x22a6   :  { %v1783_v56 = vadd.f32 %v1782_v54, %v1780_v44 }
0x22a8   :  { %1785 = vrot.lane.b32.xlu0 %v1783_v56, %s2886_s7  ;;  %v1885_v9 = vrot.slane %v1783_v56, 6 }
0x231a   :  { %v3409_v57 = vpop.permute.xlu0 %1785 }
0x231b   :  { %2706 = vmatmul.mubr.msk.f32.vlgmr.msra.gmra.mxu0 %vm231_vm9, %v3409_v57 }
0x231c   :  { %2720 = vmatpush3.msra.mxu0 %v3235_v47  ;;  %2727 = vmatprep.mubr.msk.f32.mxu0 %vm2884_vm8, %v2883_v41 }
0x231d   :  { %2721 = vmatprep.subr.mxu0 %v2883_v41 }
0x231e   :  { %2722 = vmatpush3.msra.mxu0 %v3240_v48 }
0x231f   :  { %2723 = vmatprep.subr.mxu0 %v2883_v41 }
0x2320   :  { %2724 = vmatpush3.msra.mxu0 %v3253_v42 }
0x2321   :  { %2725 = vmatprep.subr.mxu0 %v2883_v41 }
0x2322   :  { %2726 = vmatpush3.msra.mxu0 %v3263_v50 }
0x2323   :  { %2730 = vmatprep.subr.mxu0 %v2883_v41 }
0x23db   :  { %v1855_v45 = vpop.f32.mrf.mxu0 }
0x23dc   :  { %v1856_v47 = vadd.f32 %v3292_v60, %v1855_v45 }
0x23dd   :  { %v2707_v58 = vpop.f32.mrf.mxu0 }
0x23de   :  { %v1860_v61 = vrot.slane %v1856_v47, 6 }
0x23e0   :  { %1869 = vrot.lane.b32.xlu1 %v1860_v61, %s2885_s2  ;;  %v1862_v62 = vadd.f32 %v1860_v61, %v3310_v3  ;;  %v2158_v61 = vld [vmem:[%s3626_s13 + $0xf8] sm:$0xff] }
0x23e1   :  { %2483 = vmatprep.subr.mxu1 %v2158_v61 }
0x23e2   :  { %v2380_v48 = vmul.f32 -1.442695, %v1862_v62  ;;  %v2142_v62 = vld [vmem:[%s3626_s13 + $0x78] sm:$0xff] }
0x23e4   :  { %2843 = vpow2.f32 %v2380_v48  ;;  %v2157_v48 = vld [vmem:[%s3626_s13 + $0xf0] sm:$0xff] }
0x23f1   :  { %v2844_v63 = vpop.eup %2843 }
0x23f2   :  { %v1866_v0 = vadd.f32 1.0, %v2844_v63 }
0x23f4   :  { %2845 = vrcp.f32 %v1866_v0  ;;  %v2155_v0 = vld [vmem:[%s3626_s13 + $0xe0] sm:$0xff] }
0x2401   :  { %v2846_v42 = vpop.eup %2845 }
0x2402   :  { %v1879_v10 = vsub.f32 1.0, %v2846_v42  ;;  %v1887_v13 = vmul.f32 %v2846_v42, %v1885_v9  ;;  %v2136_v9 = vld [vmem:[%s3626_s13 + $0x48] sm:$0xff] }
0x2452   :  { %v1870_v1 = vpop.permute.xlu1 %1869 }
0x2453   :  { %v1872_v2 = vmul.f32 %v2846_v42, %v1870_v1  ;;  %v2139_v42 = vld [vmem:[%s3626_s13 + $0x60] sm:$0xff]  ;;  %v2154_v1 = vld [vmem:[%s3626_s13 + $0xd8] sm:$0xff] }
0x2455   :  { %1874 = vrot.lane.b32.xlu0 %v1872_v2, %s2885_s2  ;;  %v2138_v2 = vld [vmem:[%s3626_s13 + $0x58] sm:$0xff] }
0x24c7   :  { %v1875_v50 = vpop.permute.xlu0 %1874 }
0x24c8   :  { %v1877_v4 = vadd.f32 %v1875_v50, %v3310_v3  ;;  %v2153_v50 = vld [vmem:[%s3626_s13 + $0xd0] sm:$0xff] }
0x24ca   :  { %2847 = vtanh.f32 %v1877_v4  ;;  %v2137_v4 = vld [vmem:[%s3626_s13 + $0x50] sm:$0xff] }
0x24d7   :  { %v2848_v6 = vpop.eup %2847 }
0x24d8   :  { %1881 = vrot.lane.b32.xlu1 %v2848_v6, %s2886_s7  ;;  %v2152_v6 = vld [vmem:[%s3626_s13 + $0xc8] sm:$0xff] }
0x254a   :  { %v1882_v11 = vpop.permute.xlu1 %1881 }
0x254b   :  { %v1884_v12 = vmul.f32 %v1882_v11, %v1879_v10  ;;  %v2151_v10 = vld [vmem:[%s3626_s13 + $0xc0] sm:$0xff] }
0x254c   :  { %v2135_v11 = vld [vmem:[%s3626_s13 + $0x40] sm:$0xff] }
0x254d   :  { %v3429_v14 = vadd.f32 %v1887_v13, %v1884_v12  ;;  %v2150_v12 = vld [vmem:[%s3626_s13 + $0xb8] sm:$0xff] }
0x254e   :  { %v2134_v13 = vld [vmem:[%s3626_s13 + $0x38] sm:$0xff] }
0x254f   :  { %v1890_v15 = vrot.slane %v3429_v14, 2  ;;  %v1991_v5 = vrot.slane %v3429_v14, 6  ;;  %v2237_v14 = vld [vmem:[%s3628_s15] sm:$0xff] }
0x2551   :  { %1891 = vrot.lane.b32.xlu0 %v1890_v15, %s2886_s7 }
0x25c3   :  { %v1892_v16 = vpop.permute.xlu0 %1891 }
0x25c4   :  { %2717 = vmatmul.mubr.msk.f32.vlgmr.msra.gmra.mxu1 %vm231_vm9, %v1892_v16  ;;  %v2149_v16 = vld [vmem:[%s3626_s13 + $0xb0] sm:$0xff] }
0x25c5   :  { %2484 = vmatpush3.msra.mxu1 %v2142_v62 }
0x25c6   :  { %2485 = vmatprep.subr.mxu1 %v2157_v48 }
0x25c7   :  { %2486 = vmatpush3.msra.mxu1 %v2141_v7 }
0x2684   :  { %v1961_v17 = vpop.f32.mrf.mxu1 }
0x2685   :  { %v1962_v18 = vadd.f32 %v3292_v60, %v1961_v17  ;;  %v2133_v17 = vld [vmem:[%s3626_s13 + $0x30] sm:$0xff] }
0x2686   :  { %v2718_v19 = vpop.f32.mrf.mxu1 }
0x2687   :  { %v1966_v20 = vrot.slane %v1962_v18, 4  ;;  %v2148_v18 = vld [vmem:[%s3626_s13 + $0xa8] sm:$0xff] }
0x2688   :  { %v2132_v19 = vld [vmem:[%s3626_s13 + $0x28] sm:$0xff] }
0x2689   :  { %1975 = vrot.lane.b32.xlu1 %v1966_v20, %s2885_s2  ;;  %v1968_v22 = vadd.f32 %v1966_v20, %v3310_v3  ;;  %v2147_v20 = vld [vmem:[%s3626_s13 + $0xa0] sm:$0xff] }
0x268b   :  { %v2382_v24 = vmul.f32 -1.442695, %v1968_v22  ;;  %v2131_v22 = vld [vmem:[%s3626_s13 + $0x20] sm:$0xff] }
0x268d   :  { %2849 = vpow2.f32 %v2382_v24  ;;  %v2146_v24 = vld [vmem:[%s3626_s13 + $0x98] sm:$0xff] }
0x269a   :  { %v2850_v59 = vpop.eup %2849 }
0x269b   :  { %v1972_v25 = vadd.f32 1.0, %v2850_v59  ;;  %v2130_v59 = vld [vmem:[%s3626_s13 + $0x18] sm:$0xff] }
0x269d   :  { %2851 = vrcp.f32 %v1972_v25  ;;  %v2145_v25 = vld [vmem:[%s3626_s13 + $0x90] sm:$0xff] }
0x26aa   :  { %v2852_v26 = vpop.eup %2851 }
0x26ab   :  { %v1985_v33 = vsub.f32 1.0, %v2852_v26  ;;  %v1993_v35 = vmul.f32 %v2852_v26, %v1991_v5 }
0x26fb   :  { %v1976_v27 = vpop.permute.xlu1 %1975 }
0x26fc   :  { %v1978_v28 = vmul.f32 %v2852_v26, %v1976_v27  ;;  %v2129_v26 = vld [vmem:[%s3626_s13 + $0x10] sm:$0xff]  ;;  %v2144_v27 = vld [vmem:[%s3626_s13 + $0x88] sm:$0xff] }
0x26fe   :  { %1980 = vrot.lane.b32.xlu0 %v1978_v28, %s2885_s2  ;;  %v2128_v28 = vld [vmem:[%s3626_s13 + $0x8] sm:$0xff] }
0x2770   :  { %v1981_v29 = vpop.permute.xlu0 %1980 }
0x2771   :  { %v1983_v30 = vadd.f32 %v1981_v29, %v3310_v3  ;;  %v2143_v29 = vld [vmem:[%s3626_s13 + $0x80] sm:$0xff] }
0x2773   :  { %2853 = vtanh.f32 %v1983_v30  ;;  %v2127_v30 = vld [vmem:[%s3626_s13] sm:$0xff] }
0x2780   :  { %v2854_v32 = vpop.eup %2853 }
0x2781   :  { %1987 = vrot.lane.b32.xlu1 %v2854_v32, %s2886_s7 }
0x27f3   :  { %v1988_v34 = vpop.permute.xlu1 %1987 }
0x27f4   :  { %v1990_v36 = vmul.f32 %v1988_v34, %v1985_v33  ;;  %v2244_v34 = vld [vmem:[%s3628_s15 + $0x38] sm:$0xff] }
0x27f6   :  { %v3443_v37 = vadd.f32 %v1993_v35, %v1990_v36  ;;  %v2243_v35 = vld [vmem:[%s3628_s15 + $0x30] sm:$0xff] }
0x27f8   :  { %v1996_v38 = vrot.slane %v3443_v37, 4  ;;  %v2097_v32 = vrot.slane %v3443_v37, 6  ;;  %v2242_v37 = vld [vmem:[%s3628_s15 + $0x28] sm:$0xff] }
0x27fa   :  { %1997 = vrot.lane.b32.xlu0 %v1996_v38, %s2886_s7 }
0x286c   :  { %v1998_v39 = vpop.permute.xlu0 %1997 }
0x286d   :  { %2728 = vmatmul.mubr.msk.f32.vlgmr.msra.gmra.mxu0 %vm231_vm9, %v1998_v39 }
0x286e   :  { %2746 = vmatprep.mubr.msk.f32.mxu0 %vm2884_vm8, %v2883_v41  ;;  %2731 = vmatpush3.msra.mxu0 %v2244_v34 }
0x286f   :  { %2732 = vmatprep.subr.mxu0 %v2883_v41 }
0x2870   :  { %2733 = vmatpush3.msra.mxu0 %v2243_v35 }
0x2871   :  { %2734 = vmatprep.subr.mxu0 %v2883_v41 }
0x2872   :  { %2735 = vmatpush3.msra.mxu0 %v2242_v37 }
0x2873   :  { %2736 = vmatprep.subr.mxu0 %v2883_v41 }
0x2874   :  { %2737 = vmatpush3.msra.mxu0 %v2241_v40 }
0x2875   :  { %2738 = vmatprep.subr.mxu0 %v2883_v41 }
0x292d   :  { %v2067_v55 = vpop.f32.mrf.mxu0 }
0x292e   :  { %v2068_v53 = vadd.f32 %v3292_v60, %v2067_v55  ;;  %v2755_v60 = vpack.i.bf16 %v1576_v8, %v1996_v38  ;;  %v2140_v8 = vld [vmem:[%s3626_s13 + $0x68] sm:$0xff] }
0x292f   :  { %v2729_v23 = vpop.f32.mrf.mxu0 }
0x2930   :  { %v2072_v49 = vrot.slane %v2068_v53, 2 }
0x2932   :  { %2081 = vrot.lane.b32.xlu1 %v2072_v49, %s2885_s2  ;;  %v2074_v51 = vadd.f32 %v2072_v49, %v3310_v3 }
0x2934   :  { %v2384_v43 = vmul.f32 -1.442695, %v2074_v51 }
0x2936   :  { %2855 = vpow2.f32 %v2384_v43 }
0x2943   :  { %v2856_v52 = vpop.eup %2855 }
0x2944   :  { %v2078_v54 = vadd.f32 1.0, %v2856_v52  ;;  %v2119_v52 = vsel %vm231_vm9, %v3319_v21, %v1470_v46  ;;  %v2240_v21 = vld [vmem:[%s3628_s15 + $0x18] sm:$0xff]  ;;  %v2239_v46 = vld [vmem:[%s3628_s15 + $0x10] sm:$0xff] }
0x2945   :  { %2739 = vmatpush3.msra.mxu0 %v2240_v21 }
0x2946   :  { %2857 = vrcp.f32 %v2078_v54  ;;  %2740 = vmatprep.subr.mxu0 %v2883_v41 }
0x2947   :  { %2741 = vmatpush3.msra.mxu0 %v2239_v46 }
0x2948   :  { %2742 = vmatprep.subr.mxu0 %v2883_v41 }
0x2953   :  { %v3453_v44 = vpop.eup %2857 }
0x2954   :  { %v2091_v5 = vsub.f32 1.0, %v3453_v44  ;;  %v2099_v36 = vmul.f32 %v3453_v44, %v2097_v32 }
0x29a4   :  { %v2082_v56 = vpop.permute.xlu1 %2081 }
0x29a5   :  { %v2084_v45 = vmul.f32 %v3453_v44, %v2082_v56 }
0x29a7   :  { %2086 = vrot.lane.b32.xlu0 %v2084_v45, %s2885_s2 }
0x29ab   :  { %2756 = vrot.lane.b32.xlu0 %v2755_v60, %s2887_s11 }
0x2a19   :  { %v2087_v47 = vpop.permute.xlu0 %2086 }
0x2a1a   :  { %v2089_v58 = vadd.f32 %v2087_v47, %v3310_v3  ;;  %v2156_v3 = vld [vmem:[%s3626_s13 + $0xe8] sm:$0xff] }
0x2a1b   :  { %2487 = vmatprep.subr.mxu1 %v2156_v3 }
0x2a1c   :  { %2859 = vtanh.f32 %v2089_v58  ;;  %2488 = vmatpush3.msra.mxu1 %v2140_v8  ;;  %v2385_v58 = vld [vmem:[%s3627_s14] ss:$0 sm:$0xff] }
0x2a1d   :  { %2489 = vmatprep.subr.mxu1 %v2155_v0  ;;  %v2757_v23 = vpop.permute.xlu0 %2756 }
0x2a1e   :  { %2490 = vmatpush3.msra.mxu1 %v2139_v42  ;;  %v2759_v49 = vunpack.i.h.bf16 %v2757_v23  ;;  %v2758_v51 = vunpack.i.l.bf16 %v2757_v23 }
0x2a1f   :  { %2491 = vmatprep.subr.mxu1 %v2154_v1 }
0x2a20   :  { %2492 = vmatpush3.msra.mxu1 %v2138_v2  ;;  %v2121_v56 = vsel %vm2120_vm10, %v2119_v52, %v2759_v49 }
0x2a21   :  { %2493 = vmatprep.subr.mxu1 %v2153_v50 }
0x2a22   :  { %2494 = vmatpush3.msra.mxu1 %v2137_v4 }
0x2a23   :  { %2495 = vmatprep.subr.mxu1 %v2152_v6 }
0x2a24   :  { %2496 = vmatpush3.msra.mxu1 %v2136_v9 }
0x2a25   :  { %2497 = vmatprep.subr.mxu1 %v2151_v10 }
0x2a26   :  { %2498 = vmatpush3.msra.mxu1 %v2135_v11 }
0x2a27   :  { %2499 = vmatprep.subr.mxu1 %v2150_v12 }
0x2a28   :  { %2500 = vmatpush3.msra.mxu1 %v2134_v13 }
0x2a29   :  { %v2860_v63 = vpop.eup %2859  ;;  %2501 = vmatprep.subr.mxu1 %v2149_v16 }
0x2a2a   :  { %2093 = vrot.lane.b32.xlu1 %v2860_v63, %s2886_s7  ;;  %2502 = vmatpush3.msra.mxu1 %v2133_v17 }
0x2a2b   :  { %2503 = vmatprep.subr.mxu1 %v2148_v18 }
0x2a2c   :  { %2504 = vmatpush3.msra.mxu1 %v2132_v19 }
0x2a2d   :  { %2505 = vmatprep.subr.mxu1 %v2147_v20 }
0x2a2e   :  { %2506 = vmatpush3.msra.mxu1 %v2131_v22 }
0x2a2f   :  { %2507 = vmatprep.subr.mxu1 %v2146_v24 }
0x2a30   :  { %2508 = vmatpush3.msra.mxu1 %v2130_v59 }
0x2a31   :  { %2509 = vmatprep.subr.mxu1 %v2145_v25 }
0x2a32   :  { %2510 = vmatpush3.msra.mxu1 %v2129_v26 }
0x2a33   :  { %2511 = vmatprep.subr.mxu1 %v2144_v27 }
0x2a34   :  { %2512 = vmatpush3.msra.mxu1 %v2128_v28 }
0x2a35   :  { %2513 = vmatprep.subr.mxu1 %v2143_v29 }
0x2a36   :  { %2514 = vmatpush3.msra.mxu1 %v2127_v30 }
0x2a9c   :  { %v2094_v33 = vpop.permute.xlu1 %2093 }
0x2a9d   :  { %v2096_v38 = vmul.f32 %v2094_v33, %v2091_v5 }
0x2a9f   :  { %v2100_v39 = vadd.f32 %v2099_v36, %v2096_v38 }
0x2aa1   :  { %v2115_v55 = vrot.slane %v2100_v39, 6 }
0x2aa3   :  { %v2760_v53 = vpack.i.bf16 %v3387_v31, %v2115_v55  ;;  %v2124_v31 = vsel %vm231_vm9, %v3409_v57, %v1890_v15  ;;  %v2238_v57 = vld [vmem:[%s3628_s15 + $0x8] sm:$0xff]  ;;  %s2861_s15 = scalar_lea.vmem %s2334_s26, 32 }
0x2aa4   :  { %v2125_v45 = vsel %vm2120_vm10, %v2124_v31, %v2758_v51  ;;  %2743 = vmatpush3.msra.mxu0 %v2238_v57  ;;  %p2862_p0 = scmp.ne.s32.totalorder %s2334_s26, %s2861_s15  ;;  %p2867_p2 = scmp.lt.s32.totalorder %s2861_s15, %s2861_s15 }
0x2aa5   :  { %2761 = vrot.lane.b32.xlu1 %v2760_v53, %s2885_s2  ;;  %2744 = vmatprep.subr.mxu0 %v2883_v41  ;;  %v2386_v41 = vld [vmem:[%s3629_s16] ss:$0 sm:$0xff] }
0x2aa6   :  { %2745 = vmatpush3.msra.mxu0 %v2237_v14  ;;  %p2868_p3 = por %p2867_p2, %p2866_p1 }
0x2aa8   :  { %p2869_p4 = pnand %p2868_p3, %p2862_p0 }
0x2b17   :  { %v2762_v43 = vpop.permute.xlu1 %2761 }
0x2b18   :  { %v2764_v54 = vunpack.i.h.bf16 %v2762_v43  ;;  %v2763_v44 = vunpack.i.l.bf16 %v2762_v43 }
0x2b1a   :  { %v2126_v60 = vsel %vm2122_vm11, %v2125_v45, %v2763_v44  ;;  %v2123_v47 = vsel %vm2122_vm11, %v2121_v56, %v2764_v54 }
0x2b1b   :  { %2230 = vmatprep.mubr.f32.mxu1 %v2126_v60 }
0x2b1c   :  { %2231 = vmatmul.mubr.f32.vlgmr.msra.gmra.mxu1 %v2123_v47 }
0x2bdc   :  { %v2515_v15 = vpop.f32.mrf.mxu1 }
0x2bde   :  { %v2516_v61 = vpop.f32.mrf.mxu1 }
0x2bdf   :  { %v2517_v62 = vadd.f32 %v2516_v61, %v2515_v15 }
0x2be1   :  { %v2233_v48 = vadd.f32 %v2517_v62, %v2385_v58 }
0x2be3   :  { %v2236_v7 = vmax.f32 %v2233_v48, 0.0 }
0x2be5   :  { %2747 = vmatmul.mubr.msk.f32.vlgmr.msra.gmra.mxu0 %vm2120_vm10, %v2236_v7 }
0x2ca5   :  { %v2321_v3 = vpop.f32.mrf.mxu0 }
0x2ca6   :  { %v2322_v8 = vadd.f32 %v2386_v41, %v2321_v3 }
0x2ca7   :  { %v2748_v63 = vpop.f32.mrf.mxu0 }
0x2ca8   :  { %2326 = vst.msk [vmem:[#allocation2] sm:$0x3] %vm2325_vm12, %v2322_v8 }
0x2ca9   :  { %2872 = shalt.err (!%p2869_p4)
}
0x2caa   :  { %2336 = dma.vmem_to_hbm [thread:$0]  %s2334_s26, 32, %s3630_s17, [#allocation3]  }
0x2cab   :  { %2881 = dma.done.wait [#allocation3], 32  }
0x2cac   :  { %2882 = vsyncadd [#allocation3], 4294967264 }
0x2cad   :  { %2340 = vsyncpa [#allocation3], 1 }

</bundles_post_ra>
